<compile_context>
chip_gen: v5e
topology: v5e:2x2
jax: 0.10.0
libtpu: 0.0.40
codegen_flags: <defaults>
</compile_context>

<pallas_src>
import functools

import jax
import jax.numpy as jnp
from jax.experimental import pallas as pl
from jax.experimental.pallas import tpu as pltpu

# ---------------- config (small, BERT-shaped) ----------------
BATCH = 2
SEQ = 8
HIDDEN = 32
N_HEADS = 2
HEAD_DIM = HIDDEN // N_HEADS
INTERMEDIATE = 64
N_LAYERS = 2
VOCAB = 100
MAX_POS = 16
TYPE_VOCAB = 2
OUTPUT_DIM = 16
LN_EPS = 1e-12


# ---------------- in-kernel helpers ----------------
def _layernorm(x, g, b, eps):
    mu = jnp.mean(x, axis=-1, keepdims=True)
    xc = x - mu
    var = jnp.mean(xc * xc, axis=-1, keepdims=True)
    return xc * jax.lax.rsqrt(var + eps) * g + b


def _gelu(x):
    # tanh approximation (EUP-friendly).
    # TODO(synk): switch to exact erf GELU when matching the real HF checkpoint.
    return 0.5 * x * (1.0 + jnp.tanh(0.7978845608028654 * (x + 0.044715 * x * x * x)))


# ---------------- fused encoder kernel ----------------
def _encoder_kernel(emb_ref, mask_ref, emb_g_ref, emb_b_ref,
                    wqkv_ref, bqkv_ref, wo_ref, bo_ref,
                    ln1_g_ref, ln1_b_ref, w1_ref, b1_ref,
                    w2_ref, b2_ref, ln2_g_ref, ln2_b_ref,
                    proj_w_ref, out_ref,
                    *, n_layers, batch, seq, n_heads, head_dim, eps):
    H = n_heads * head_dim
    scale = 1.0 / (head_dim ** 0.5)

    # embeddings -> LayerNorm (no zero-residual DMA)
    x = _layernorm(emb_ref[...], emb_g_ref[...], emb_b_ref[...], eps)

    # additive attention mask, (B, 1, S); broadcast over heads / query positions
    add_mask = (1.0 - mask_ref[...])[:, None, :] * -1e9

    for l in range(n_layers):                       # static unroll, L = 2
        wqkv = wqkv_ref[l]                          # (H, 3H)
        bqkv = bqkv_ref[l]                          # (1, 3H)
        wo = wo_ref[l]                              # (H, H)
        bo = bo_ref[l]                              # (1, H)

        # fused Q|K|V projection: one matmul, x read once, lane-wider N for MXU
        qkv = jnp.dot(x, wqkv, preferred_element_type=jnp.float32) + bqkv

        # attention: batched over B, static loop over heads (all in-VMEM)
        attn = None
        for h in range(n_heads):
            lo = h * head_dim
            q = qkv[:, lo:lo + head_dim].reshape(batch, seq, head_dim) * scale
            k = qkv[:, H + lo:H + lo + head_dim].reshape(batch, seq, head_dim)
            v = qkv[:, 2 * H + lo:2 * H + lo + head_dim].reshape(batch, seq, head_dim)
            s = jnp.einsum('bqd,bkd->bqk', q, k,
                           preferred_element_type=jnp.float32) + add_mask
            s = s - jnp.max(s, axis=-1, keepdims=True)
            p = jnp.exp(s)
            p = p * pl.reciprocal(jnp.sum(p, axis=-1, keepdims=True), approx=True)
            ctx = jnp.einsum('bqk,bkd->bqd', p, v,
                             preferred_element_type=jnp.float32)
            ctx = ctx.reshape(batch * seq, head_dim)
            # head-merge folded into the output projection:
            #   attn_out = concat_h(ctx_h) @ wo == sum_h ctx_h @ wo[h*dh:(h+1)*dh]
            contrib = jnp.dot(ctx, wo[lo:lo + head_dim, :],
                              preferred_element_type=jnp.float32)
            attn = contrib if attn is None else attn + contrib
        attn = attn + bo

        x = _layernorm(attn + x, ln1_g_ref[l], ln1_b_ref[l], eps)

        # FFN
        h_ff = jnp.dot(x, w1_ref[l], preferred_element_type=jnp.float32) + b1_ref[l]
        h_ff = _gelu(h_ff)
        h_ff = jnp.dot(h_ff, w2_ref[l], preferred_element_type=jnp.float32) + b2_ref[l]
        x = _layernorm(h_ff + x, ln2_g_ref[l], ln2_b_ref[l], eps)

    # nn.Dropout is identity in eval mode; projection has no bias.
    out_ref[...] = jnp.dot(x, proj_w_ref[...], preferred_element_type=jnp.float32)


def _full_spec(shape):
    n = len(shape)
    return pl.BlockSpec(shape, lambda i, _n=n: (0,) * _n)


def encoder_call(params, emb, attention_mask, batch, seq):
    """One fused pallas_call for the whole encoder + projection."""
    inputs = (
        emb, attention_mask,
        params["emb_ln_g"], params["emb_ln_b"],
        params["wqkv"], params["bqkv"], params["wo"], params["bo"],
        params["ln1_g"], params["ln1_b"], params["w1"], params["b1"],
        params["w2"], params["b2"], params["ln2_g"], params["ln2_b"],
        params["proj_w"],
    )
    kernel = functools.partial(
        _encoder_kernel, n_layers=N_LAYERS, batch=batch, seq=seq,
        n_heads=N_HEADS, head_dim=HEAD_DIM, eps=LN_EPS)
    return pl.pallas_call(
        kernel,
        out_shape=jax.ShapeDtypeStruct((batch * seq, OUTPUT_DIM), jnp.float32),
        grid=(1,),
        in_specs=[_full_spec(a.shape) for a in inputs],
        out_specs=_full_spec((batch * seq, OUTPUT_DIM)),
        compiler_params=pltpu.CompilerParams(
            dimension_semantics=("arbitrary",)),
    )(*inputs)


# ---------------- parameter init (deterministic, synthetic) ----------------
def init_params(key):
    def normal(k, shape, std=0.02):
        return std * jax.random.normal(k, shape, jnp.float32)

    keys = jax.random.split(key, 8)
    return {
        "word_emb": normal(keys[0], (VOCAB, HIDDEN)),
        "pos_emb": normal(keys[1], (MAX_POS, HIDDEN)),
        "type_emb": normal(keys[2], (TYPE_VOCAB, HIDDEN)),
        "emb_ln_g": jnp.ones((1, HIDDEN), jnp.float32),
        "emb_ln_b": jnp.zeros((1, HIDDEN), jnp.float32),
        # fused Q|K|V projection weights, stacked over layers
        "wqkv": normal(keys[3], (N_LAYERS, HIDDEN, 3 * HIDDEN)),
        "bqkv": jnp.zeros((N_LAYERS, 1, 3 * HIDDEN), jnp.float32),
        "wo": normal(keys[4], (N_LAYERS, HIDDEN, HIDDEN)),
        "bo": jnp.zeros((N_LAYERS, 1, HIDDEN), jnp.float32),
        "ln1_g": jnp.ones((N_LAYERS, 1, HIDDEN), jnp.float32),
        "ln1_b": jnp.zeros((N_LAYERS, 1, HIDDEN), jnp.float32),
        "w1": normal(keys[5], (N_LAYERS, HIDDEN, INTERMEDIATE)),
        "b1": jnp.zeros((N_LAYERS, 1, INTERMEDIATE), jnp.float32),
        "w2": normal(keys[6], (N_LAYERS, INTERMEDIATE, HIDDEN)),
        "b2": jnp.zeros((N_LAYERS, 1, HIDDEN), jnp.float32),
        "ln2_g": jnp.ones((N_LAYERS, 1, HIDDEN), jnp.float32),
        "ln2_b": jnp.zeros((N_LAYERS, 1, HIDDEN), jnp.float32),
        # TextEncoder.projection: nn.Linear(hidden, output_dim, bias=False),
        # stored pre-transposed as (HIDDEN, OUTPUT_DIM) so y = x @ w
        "proj_w": normal(keys[7], (HIDDEN, OUTPUT_DIM)),
    }


# ---------------- forward (gathers in JAX, everything else in the fused kernel) ----
def text_encoder_forward(params, input_ids, attention_mask=None,
                         token_type_ids=None, use_cls_token=False):
    B, S = input_ids.shape
    if attention_mask is None:
        attention_mask = jnp.ones((B, S), jnp.float32)
    attention_mask = attention_mask.astype(jnp.float32)
    if token_type_ids is None:
        token_type_ids = jnp.zeros((B, S), jnp.int32)

    # embedding-table gathers stay as plain-JAX glue
    positions = jnp.arange(S)
    emb = (params["word_emb"][input_ids]
           + params["pos_emb"][positions][None, :, :]
           + params["type_emb"][token_type_ids])
    emb = emb.reshape(B * S, HIDDEN)

    out = encoder_call(params, emb, attention_mask, B, S)   # (B*S, OUTPUT_DIM)
    out = out.reshape(B, S, OUTPUT_DIM)
    if use_cls_token:
        # projection is row-wise, so pooling before/after it is equivalent
        out = out[:, 0]
    # nn.Dropout: eval mode -> identity (no RNG mask applied)
    return out


if __name__ == "__main__":
    key = jax.random.PRNGKey(0)
    pkey, ikey = jax.random.split(key)
    params = init_params(pkey)

    input_ids = jax.random.randint(ikey, (BATCH, SEQ), 0, VOCAB, jnp.int32)
    attention_mask = jnp.array(
        [[1] * SEQ, [1] * (SEQ - 2) + [0, 0]], jnp.float32)   # batch 1 has padding
    token_type_ids = jnp.zeros((BATCH, SEQ), jnp.int32)

    out = text_encoder_forward(params, input_ids, attention_mask, token_type_ids,
                               use_cls_token=False)
    out = jax.block_until_ready(out)
    assert out.shape == (BATCH, SEQ, OUTPUT_DIM), out.shape
    assert bool(jnp.all(jnp.isfinite(out)))
    print("KERNEL_OK")
</pallas_src>

<mosaic_0001>
module attributes {stable_mosaic.version = 11 : i64} {
  func.func @_encoder_kernel(%arg0: i32, %arg1: memref<16x32xf32, #tpu.memory_space<vmem>>, %arg2: memref<2x8xf32, #tpu.memory_space<vmem>>, %arg3: memref<1x32xf32, #tpu.memory_space<vmem>>, %arg4: memref<1x32xf32, #tpu.memory_space<vmem>>, %arg5: memref<2x32x96xf32, #tpu.memory_space<vmem>>, %arg6: memref<2x1x96xf32, #tpu.memory_space<vmem>>, %arg7: memref<2x32x32xf32, #tpu.memory_space<vmem>>, %arg8: memref<2x1x32xf32, #tpu.memory_space<vmem>>, %arg9: memref<2x1x32xf32, #tpu.memory_space<vmem>>, %arg10: memref<2x1x32xf32, #tpu.memory_space<vmem>>, %arg11: memref<2x32x64xf32, #tpu.memory_space<vmem>>, %arg12: memref<2x1x64xf32, #tpu.memory_space<vmem>>, %arg13: memref<2x64x32xf32, #tpu.memory_space<vmem>>, %arg14: memref<2x1x32xf32, #tpu.memory_space<vmem>>, %arg15: memref<2x1x32xf32, #tpu.memory_space<vmem>>, %arg16: memref<2x1x32xf32, #tpu.memory_space<vmem>>, %arg17: memref<32x16xf32, #tpu.memory_space<vmem>>, %arg18: memref<16x16xf32, #tpu.memory_space<vmem>>) attributes {dimension_semantics = [#tpu.dimension_semantics<arbitrary>], iteration_bounds = array<i64: 1>, scalar_prefetch = 0 : i64, scratch_operands = 0 : i64, tpu.core_type = #tpu.core_type<tc>, window_params = [{pipeline_mode = #tpu.pipeline_mode<synchronous>, transform_indices = @transform_0, window_bounds = array<i64: 16, 32>}, {pipeline_mode = #tpu.pipeline_mode<synchronous>, transform_indices = @transform_1, window_bounds = array<i64: 2, 8>}, {pipeline_mode = #tpu.pipeline_mode<synchronous>, transform_indices = @transform_2, window_bounds = array<i64: 1, 32>}, {pipeline_mode = #tpu.pipeline_mode<synchronous>, transform_indices = @transform_3, window_bounds = array<i64: 1, 32>}, {pipeline_mode = #tpu.pipeline_mode<synchronous>, transform_indices = @transform_4, window_bounds = array<i64: 2, 32, 96>}, {pipeline_mode = #tpu.pipeline_mode<synchronous>, transform_indices = @transform_5, window_bounds = array<i64: 2, 1, 96>}, {pipeline_mode = #tpu.pipeline_mode<synchronous>, transform_indices = @transform_6, window_bounds = array<i64: 2, 32, 32>}, {pipeline_mode = #tpu.pipeline_mode<synchronous>, transform_indices = @transform_7, window_bounds = array<i64: 2, 1, 32>}, {pipeline_mode = #tpu.pipeline_mode<synchronous>, transform_indices = @transform_8, window_bounds = array<i64: 2, 1, 32>}, {pipeline_mode = #tpu.pipeline_mode<synchronous>, transform_indices = @transform_9, window_bounds = array<i64: 2, 1, 32>}, {pipeline_mode = #tpu.pipeline_mode<synchronous>, transform_indices = @transform_10, window_bounds = array<i64: 2, 32, 64>}, {pipeline_mode = #tpu.pipeline_mode<synchronous>, transform_indices = @transform_11, window_bounds = array<i64: 2, 1, 64>}, {pipeline_mode = #tpu.pipeline_mode<synchronous>, transform_indices = @transform_12, window_bounds = array<i64: 2, 64, 32>}, {pipeline_mode = #tpu.pipeline_mode<synchronous>, transform_indices = @transform_13, window_bounds = array<i64: 2, 1, 32>}, {pipeline_mode = #tpu.pipeline_mode<synchronous>, transform_indices = @transform_14, window_bounds = array<i64: 2, 1, 32>}, {pipeline_mode = #tpu.pipeline_mode<synchronous>, transform_indices = @transform_15, window_bounds = array<i64: 2, 1, 32>}, {pipeline_mode = #tpu.pipeline_mode<synchronous>, transform_indices = @transform_16, window_bounds = array<i64: 32, 16>}, {pipeline_mode = #tpu.pipeline_mode<synchronous>, transform_indices = @transform_17, window_bounds = array<i64: 16, 16>}]} {
    %c0 = arith.constant 0 : index
    %c0_0 = arith.constant 0 : index
    %0 = vector.load %arg1[%c0, %c0_0] : memref<16x32xf32, #tpu.memory_space<vmem>>, vector<16x32xf32>
    %c0_1 = arith.constant 0 : index
    %c0_2 = arith.constant 0 : index
    %1 = vector.load %arg3[%c0_1, %c0_2] : memref<1x32xf32, #tpu.memory_space<vmem>>, vector<1x32xf32>
    %c0_3 = arith.constant 0 : index
    %c0_4 = arith.constant 0 : index
    %2 = vector.load %arg4[%c0_3, %c0_4] : memref<1x32xf32, #tpu.memory_space<vmem>>, vector<1x32xf32>
    %cst = arith.constant dense<0.000000e+00> : vector<16xf32>
    %3 = vector.multi_reduction <add>, %0, %cst [1] : vector<16x32xf32> to vector<16xf32>
    %4 = vector.shape_cast %3 : vector<16xf32> to vector<16x1xf32>
    %cst_5 = arith.constant 3.200000e+01 : f32
    %5 = vector.broadcast %cst_5 : f32 to vector<16x1xf32>
    %6 = arith.divf %4, %5 : vector<16x1xf32>
    %7 = vector.broadcast %6 : vector<16x1xf32> to vector<16x32xf32>
    %8 = arith.subf %0, %7 : vector<16x32xf32>
    %9 = arith.mulf %8, %8 : vector<16x32xf32>
    %cst_6 = arith.constant dense<0.000000e+00> : vector<16xf32>
    %10 = vector.multi_reduction <add>, %9, %cst_6 [1] : vector<16x32xf32> to vector<16xf32>
    %11 = vector.shape_cast %10 : vector<16xf32> to vector<16x1xf32>
    %cst_7 = arith.constant 3.200000e+01 : f32
    %12 = vector.broadcast %cst_7 : f32 to vector<16x1xf32>
    %13 = arith.divf %11, %12 : vector<16x1xf32>
    %cst_8 = arith.constant 9.99999996E-13 : f32
    %14 = vector.broadcast %cst_8 : f32 to vector<16x1xf32>
    %15 = arith.addf %13, %14 : vector<16x1xf32>
    %16 = math.rsqrt %15 : vector<16x1xf32>
    %17 = vector.broadcast %16 : vector<16x1xf32> to vector<16x32xf32>
    %18 = arith.mulf %8, %17 : vector<16x32xf32>
    %19 = vector.broadcast %1 : vector<1x32xf32> to vector<16x32xf32>
    %20 = arith.mulf %18, %19 : vector<16x32xf32>
    %21 = vector.broadcast %2 : vector<1x32xf32> to vector<16x32xf32>
    %22 = arith.addf %20, %21 : vector<16x32xf32>
    %c0_9 = arith.constant 0 : index
    %c0_10 = arith.constant 0 : index
    %23 = vector.load %arg2[%c0_9, %c0_10] : memref<2x8xf32, #tpu.memory_space<vmem>>, vector<2x8xf32>
    %cst_11 = arith.constant 1.000000e+00 : f32
    %24 = vector.broadcast %cst_11 : f32 to vector<2x8xf32>
    %25 = arith.subf %24, %23 : vector<2x8xf32>
    %26 = vector.shape_cast %25 : vector<2x8xf32> to vector<2x1x8xf32>
    %cst_12 = arith.constant -1.000000e+09 : f32
    %27 = vector.broadcast %cst_12 : f32 to vector<2x1x8xf32>
    %28 = arith.mulf %26, %27 : vector<2x1x8xf32>
    %c0_13 = arith.constant 0 : index
    %c0_14 = arith.constant 0 : index
    %c0_15 = arith.constant 0 : index
    %29 = vector.load %arg5[%c0_13, %c0_14, %c0_15] : memref<2x32x96xf32, #tpu.memory_space<vmem>>, vector<1x32x96xf32>
    %30 = vector.shape_cast %29 : vector<1x32x96xf32> to vector<32x96xf32>
    %c0_16 = arith.constant 0 : index
    %c0_17 = arith.constant 0 : index
    %c0_18 = arith.constant 0 : index
    %31 = vector.load %arg6[%c0_16, %c0_17, %c0_18] : memref<2x1x96xf32, #tpu.memory_space<vmem>>, vector<1x1x96xf32>
    %32 = vector.shape_cast %31 : vector<1x1x96xf32> to vector<1x96xf32>
    %c0_19 = arith.constant 0 : index
    %c0_20 = arith.constant 0 : index
    %c0_21 = arith.constant 0 : index
    %33 = vector.load %arg7[%c0_19, %c0_20, %c0_21] : memref<2x32x32xf32, #tpu.memory_space<vmem>>, vector<1x32x32xf32>
    %34 = vector.shape_cast %33 : vector<1x32x32xf32> to vector<32x32xf32>
    %c0_22 = arith.constant 0 : index
    %c0_23 = arith.constant 0 : index
    %c0_24 = arith.constant 0 : index
    %35 = vector.load %arg8[%c0_22, %c0_23, %c0_24] : memref<2x1x32xf32, #tpu.memory_space<vmem>>, vector<1x1x32xf32>
    %36 = vector.shape_cast %35 : vector<1x1x32xf32> to vector<1x32xf32>
    %cst_25 = arith.constant dense<0.000000e+00> : vector<16x96xf32>
    %37 = tpu.matmul %22, %30, %cst_25 {dimension_numbers = #tpu.dot_dimension_numbers<[1], [0], [0], [1], [0, 0, 1, 1], [], []>} : vector<16x32xf32>, vector<32x96xf32>, vector<16x96xf32> -> vector<16x96xf32>
    %38 = vector.broadcast %32 : vector<1x96xf32> to vector<16x96xf32>
    %39 = arith.addf %37, %38 : vector<16x96xf32>
    %40 = vector.extract_strided_slice %39 {offsets = [0, 0], sizes = [16, 16], strides = [1, 1]} : vector<16x96xf32> to vector<16x16xf32>
    %41 = vector.shape_cast %40 : vector<16x16xf32> to vector<2x8x16xf32>
    %cst_26 = arith.constant 2.500000e-01 : f32
    %42 = vector.broadcast %cst_26 : f32 to vector<2x8x16xf32>
    %43 = arith.mulf %41, %42 : vector<2x8x16xf32>
    %44 = vector.extract_strided_slice %39 {offsets = [0, 32], sizes = [16, 16], strides = [1, 1]} : vector<16x96xf32> to vector<16x16xf32>
    %45 = vector.shape_cast %44 : vector<16x16xf32> to vector<2x8x16xf32>
    %46 = vector.extract_strided_slice %39 {offsets = [0, 64], sizes = [16, 16], strides = [1, 1]} : vector<16x96xf32> to vector<16x16xf32>
    %47 = vector.shape_cast %46 : vector<16x16xf32> to vector<2x8x16xf32>
    "tpu.trace_start"() <{level = 10 : i32, message = "bqd,bkd->bqk"}> : () -> ()
    %cst_27 = arith.constant dense<0.000000e+00> : vector<2x8x8xf32>
    %48 = tpu.matmul %43, %45, %cst_27 {dimension_numbers = #tpu.dot_dimension_numbers<[2], [2], [1], [1], [0, 0, 0, 1, 1, 1], [0], [0]>} : vector<2x8x16xf32>, vector<2x8x16xf32>, vector<2x8x8xf32> -> vector<2x8x8xf32>
    "tpu.trace_stop"() : () -> ()
    %49 = vector.broadcast %28 : vector<2x1x8xf32> to vector<2x8x8xf32>
    %50 = arith.addf %48, %49 : vector<2x8x8xf32>
    %cst_28 = arith.constant dense<0xFF800000> : vector<2x8xf32>
    %51 = vector.multi_reduction <maximumf>, %50, %cst_28 [2] : vector<2x8x8xf32> to vector<2x8xf32>
    %52 = vector.shape_cast %51 : vector<2x8xf32> to vector<2x8x1xf32>
    %53 = vector.broadcast %52 : vector<2x8x1xf32> to vector<2x8x8xf32>
    %54 = arith.subf %50, %53 : vector<2x8x8xf32>
    %55 = math.exp %54 : vector<2x8x8xf32>
    %cst_29 = arith.constant dense<0.000000e+00> : vector<2x8xf32>
    %56 = vector.multi_reduction <add>, %55, %cst_29 [2] : vector<2x8x8xf32> to vector<2x8xf32>
    %57 = vector.shape_cast %56 : vector<2x8xf32> to vector<2x8x1xf32>
    %58 = tpu.reciprocal %57 {approx = true} : vector<2x8x1xf32> -> vector<2x8x1xf32>
    %59 = vector.broadcast %58 : vector<2x8x1xf32> to vector<2x8x8xf32>
    %60 = arith.mulf %55, %59 : vector<2x8x8xf32>
    "tpu.trace_start"() <{level = 10 : i32, message = "bqk,bkd->bqd"}> : () -> ()
    %cst_30 = arith.constant dense<0.000000e+00> : vector<2x8x16xf32>
    %61 = tpu.matmul %60, %47, %cst_30 {dimension_numbers = #tpu.dot_dimension_numbers<[2], [1], [1], [2], [0, 0, 0, 1, 1, 2], [0], [0]>} : vector<2x8x8xf32>, vector<2x8x16xf32>, vector<2x8x16xf32> -> vector<2x8x16xf32>
    "tpu.trace_stop"() : () -> ()
    %62 = vector.shape_cast %61 : vector<2x8x16xf32> to vector<16x16xf32>
    %63 = vector.extract_strided_slice %34 {offsets = [0, 0], sizes = [16, 32], strides = [1, 1]} : vector<32x32xf32> to vector<16x32xf32>
    %cst_31 = arith.constant dense<0.000000e+00> : vector<16x32xf32>
    %64 = tpu.matmul %62, %63, %cst_31 {dimension_numbers = #tpu.dot_dimension_numbers<[1], [0], [0], [1], [0, 0, 1, 1], [], []>} : vector<16x16xf32>, vector<16x32xf32>, vector<16x32xf32> -> vector<16x32xf32>
    %65 = vector.extract_strided_slice %39 {offsets = [0, 16], sizes = [16, 16], strides = [1, 1]} : vector<16x96xf32> to vector<16x16xf32>
    %66 = vector.shape_cast %65 : vector<16x16xf32> to vector<2x8x16xf32>
    %cst_32 = arith.constant 2.500000e-01 : f32
    %67 = vector.broadcast %cst_32 : f32 to vector<2x8x16xf32>
    %68 = arith.mulf %66, %67 : vector<2x8x16xf32>
    %69 = vector.extract_strided_slice %39 {offsets = [0, 48], sizes = [16, 16], strides = [1, 1]} : vector<16x96xf32> to vector<16x16xf32>
    %70 = vector.shape_cast %69 : vector<16x16xf32> to vector<2x8x16xf32>
    %71 = vector.extract_strided_slice %39 {offsets = [0, 80], sizes = [16, 16], strides = [1, 1]} : vector<16x96xf32> to vector<16x16xf32>
    %72 = vector.shape_cast %71 : vector<16x16xf32> to vector<2x8x16xf32>
    "tpu.trace_start"() <{level = 10 : i32, message = "bqd,bkd->bqk"}> : () -> ()
    %cst_33 = arith.constant dense<0.000000e+00> : vector<2x8x8xf32>
    %73 = tpu.matmul %68, %70, %cst_33 {dimension_numbers = #tpu.dot_dimension_numbers<[2], [2], [1], [1], [0, 0, 0, 1, 1, 1], [0], [0]>} : vector<2x8x16xf32>, vector<2x8x16xf32>, vector<2x8x8xf32> -> vector<2x8x8xf32>
    "tpu.trace_stop"() : () -> ()
    %74 = vector.broadcast %28 : vector<2x1x8xf32> to vector<2x8x8xf32>
    %75 = arith.addf %73, %74 : vector<2x8x8xf32>
    %cst_34 = arith.constant dense<0xFF800000> : vector<2x8xf32>
    %76 = vector.multi_reduction <maximumf>, %75, %cst_34 [2] : vector<2x8x8xf32> to vector<2x8xf32>
    %77 = vector.shape_cast %76 : vector<2x8xf32> to vector<2x8x1xf32>
    %78 = vector.broadcast %77 : vector<2x8x1xf32> to vector<2x8x8xf32>
    %79 = arith.subf %75, %78 : vector<2x8x8xf32>
    %80 = math.exp %79 : vector<2x8x8xf32>
    %cst_35 = arith.constant dense<0.000000e+00> : vector<2x8xf32>
    %81 = vector.multi_reduction <add>, %80, %cst_35 [2] : vector<2x8x8xf32> to vector<2x8xf32>
    %82 = vector.shape_cast %81 : vector<2x8xf32> to vector<2x8x1xf32>
    %83 = tpu.reciprocal %82 {approx = true} : vector<2x8x1xf32> -> vector<2x8x1xf32>
    %84 = vector.broadcast %83 : vector<2x8x1xf32> to vector<2x8x8xf32>
    %85 = arith.mulf %80, %84 : vector<2x8x8xf32>
    "tpu.trace_start"() <{level = 10 : i32, message = "bqk,bkd->bqd"}> : () -> ()
    %cst_36 = arith.constant dense<0.000000e+00> : vector<2x8x16xf32>
    %86 = tpu.matmul %85, %72, %cst_36 {dimension_numbers = #tpu.dot_dimension_numbers<[2], [1], [1], [2], [0, 0, 0, 1, 1, 2], [0], [0]>} : vector<2x8x8xf32>, vector<2x8x16xf32>, vector<2x8x16xf32> -> vector<2x8x16xf32>
    "tpu.trace_stop"() : () -> ()
    %87 = vector.shape_cast %86 : vector<2x8x16xf32> to vector<16x16xf32>
    %88 = vector.extract_strided_slice %34 {offsets = [16, 0], sizes = [16, 32], strides = [1, 1]} : vector<32x32xf32> to vector<16x32xf32>
    %cst_37 = arith.constant dense<0.000000e+00> : vector<16x32xf32>
    %89 = tpu.matmul %87, %88, %cst_37 {dimension_numbers = #tpu.dot_dimension_numbers<[1], [0], [0], [1], [0, 0, 1, 1], [], []>} : vector<16x16xf32>, vector<16x32xf32>, vector<16x32xf32> -> vector<16x32xf32>
    %90 = arith.addf %64, %89 : vector<16x32xf32>
    %91 = vector.broadcast %36 : vector<1x32xf32> to vector<16x32xf32>
    %92 = arith.addf %90, %91 : vector<16x32xf32>
    %93 = arith.addf %92, %22 : vector<16x32xf32>
    %c0_38 = arith.constant 0 : index
    %c0_39 = arith.constant 0 : index
    %c0_40 = arith.constant 0 : index
    %94 = vector.load %arg9[%c0_38, %c0_39, %c0_40] : memref<2x1x32xf32, #tpu.memory_space<vmem>>, vector<1x1x32xf32>
    %95 = vector.shape_cast %94 : vector<1x1x32xf32> to vector<1x32xf32>
    %c0_41 = arith.constant 0 : index
    %c0_42 = arith.constant 0 : index
    %c0_43 = arith.constant 0 : index
    %96 = vector.load %arg10[%c0_41, %c0_42, %c0_43] : memref<2x1x32xf32, #tpu.memory_space<vmem>>, vector<1x1x32xf32>
    %97 = vector.shape_cast %96 : vector<1x1x32xf32> to vector<1x32xf32>
    %cst_44 = arith.constant dense<0.000000e+00> : vector<16xf32>
    %98 = vector.multi_reduction <add>, %93, %cst_44 [1] : vector<16x32xf32> to vector<16xf32>
    %99 = vector.shape_cast %98 : vector<16xf32> to vector<16x1xf32>
    %cst_45 = arith.constant 3.200000e+01 : f32
    %100 = vector.broadcast %cst_45 : f32 to vector<16x1xf32>
    %101 = arith.divf %99, %100 : vector<16x1xf32>
    %102 = vector.broadcast %101 : vector<16x1xf32> to vector<16x32xf32>
    %103 = arith.subf %93, %102 : vector<16x32xf32>
    %104 = arith.mulf %103, %103 : vector<16x32xf32>
    %cst_46 = arith.constant dense<0.000000e+00> : vector<16xf32>
    %105 = vector.multi_reduction <add>, %104, %cst_46 [1] : vector<16x32xf32> to vector<16xf32>
    %106 = vector.shape_cast %105 : vector<16xf32> to vector<16x1xf32>
    %cst_47 = arith.constant 3.200000e+01 : f32
    %107 = vector.broadcast %cst_47 : f32 to vector<16x1xf32>
    %108 = arith.divf %106, %107 : vector<16x1xf32>
    %cst_48 = arith.constant 9.99999996E-13 : f32
    %109 = vector.broadcast %cst_48 : f32 to vector<16x1xf32>
    %110 = arith.addf %108, %109 : vector<16x1xf32>
    %111 = math.rsqrt %110 : vector<16x1xf32>
    %112 = vector.broadcast %111 : vector<16x1xf32> to vector<16x32xf32>
    %113 = arith.mulf %103, %112 : vector<16x32xf32>
    %114 = vector.broadcast %95 : vector<1x32xf32> to vector<16x32xf32>
    %115 = arith.mulf %113, %114 : vector<16x32xf32>
    %116 = vector.broadcast %97 : vector<1x32xf32> to vector<16x32xf32>
    %117 = arith.addf %115, %116 : vector<16x32xf32>
    %c0_49 = arith.constant 0 : index
    %c0_50 = arith.constant 0 : index
    %c0_51 = arith.constant 0 : index
    %118 = vector.load %arg11[%c0_49, %c0_50, %c0_51] : memref<2x32x64xf32, #tpu.memory_space<vmem>>, vector<1x32x64xf32>
    %119 = vector.shape_cast %118 : vector<1x32x64xf32> to vector<32x64xf32>
    %cst_52 = arith.constant dense<0.000000e+00> : vector<16x64xf32>
    %120 = tpu.matmul %117, %119, %cst_52 {dimension_numbers = #tpu.dot_dimension_numbers<[1], [0], [0], [1], [0, 0, 1, 1], [], []>} : vector<16x32xf32>, vector<32x64xf32>, vector<16x64xf32> -> vector<16x64xf32>
    %c0_53 = arith.constant 0 : index
    %c0_54 = arith.constant 0 : index
    %c0_55 = arith.constant 0 : index
    %121 = vector.load %arg12[%c0_53, %c0_54, %c0_55] : memref<2x1x64xf32, #tpu.memory_space<vmem>>, vector<1x1x64xf32>
    %122 = vector.shape_cast %121 : vector<1x1x64xf32> to vector<1x64xf32>
    %123 = vector.broadcast %122 : vector<1x64xf32> to vector<16x64xf32>
    %124 = arith.addf %120, %123 : vector<16x64xf32>
    %cst_56 = arith.constant 5.000000e-01 : f32
    %125 = vector.broadcast %cst_56 : f32 to vector<16x64xf32>
    %126 = arith.mulf %125, %124 : vector<16x64xf32>
    %cst_57 = arith.constant 4.471500e-02 : f32
    %127 = vector.broadcast %cst_57 : f32 to vector<16x64xf32>
    %128 = arith.mulf %127, %124 : vector<16x64xf32>
    %129 = arith.mulf %128, %124 : vector<16x64xf32>
    %130 = arith.mulf %129, %124 : vector<16x64xf32>
    %131 = arith.addf %124, %130 : vector<16x64xf32>
    %cst_58 = arith.constant 0.797884583 : f32
    %132 = vector.broadcast %cst_58 : f32 to vector<16x64xf32>
    %133 = arith.mulf %132, %131 : vector<16x64xf32>
    %134 = math.tanh %133 : vector<16x64xf32>
    %cst_59 = arith.constant 1.000000e+00 : f32
    %135 = vector.broadcast %cst_59 : f32 to vector<16x64xf32>
    %136 = arith.addf %135, %134 : vector<16x64xf32>
    %137 = arith.mulf %126, %136 : vector<16x64xf32>
    %c0_60 = arith.constant 0 : index
    %c0_61 = arith.constant 0 : index
    %c0_62 = arith.constant 0 : index
    %138 = vector.load %arg13[%c0_60, %c0_61, %c0_62] : memref<2x64x32xf32, #tpu.memory_space<vmem>>, vector<1x64x32xf32>
    %139 = vector.shape_cast %138 : vector<1x64x32xf32> to vector<64x32xf32>
    %cst_63 = arith.constant dense<0.000000e+00> : vector<16x32xf32>
    %140 = tpu.matmul %137, %139, %cst_63 {dimension_numbers = #tpu.dot_dimension_numbers<[1], [0], [0], [1], [0, 0, 1, 1], [], []>} : vector<16x64xf32>, vector<64x32xf32>, vector<16x32xf32> -> vector<16x32xf32>
    %c0_64 = arith.constant 0 : index
    %c0_65 = arith.constant 0 : index
    %c0_66 = arith.constant 0 : index
    %141 = vector.load %arg14[%c0_64, %c0_65, %c0_66] : memref<2x1x32xf32, #tpu.memory_space<vmem>>, vector<1x1x32xf32>
    %142 = vector.shape_cast %141 : vector<1x1x32xf32> to vector<1x32xf32>
    %143 = vector.broadcast %142 : vector<1x32xf32> to vector<16x32xf32>
    %144 = arith.addf %140, %143 : vector<16x32xf32>
    %145 = arith.addf %144, %117 : vector<16x32xf32>
    %c0_67 = arith.constant 0 : index
    %c0_68 = arith.constant 0 : index
    %c0_69 = arith.constant 0 : index
    %146 = vector.load %arg15[%c0_67, %c0_68, %c0_69] : memref<2x1x32xf32, #tpu.memory_space<vmem>>, vector<1x1x32xf32>
    %147 = vector.shape_cast %146 : vector<1x1x32xf32> to vector<1x32xf32>
    %c0_70 = arith.constant 0 : index
    %c0_71 = arith.constant 0 : index
    %c0_72 = arith.constant 0 : index
    %148 = vector.load %arg16[%c0_70, %c0_71, %c0_72] : memref<2x1x32xf32, #tpu.memory_space<vmem>>, vector<1x1x32xf32>
    %149 = vector.shape_cast %148 : vector<1x1x32xf32> to vector<1x32xf32>
    %cst_73 = arith.constant dense<0.000000e+00> : vector<16xf32>
    %150 = vector.multi_reduction <add>, %145, %cst_73 [1] : vector<16x32xf32> to vector<16xf32>
    %151 = vector.shape_cast %150 : vector<16xf32> to vector<16x1xf32>
    %cst_74 = arith.constant 3.200000e+01 : f32
    %152 = vector.broadcast %cst_74 : f32 to vector<16x1xf32>
    %153 = arith.divf %151, %152 : vector<16x1xf32>
    %154 = vector.broadcast %153 : vector<16x1xf32> to vector<16x32xf32>
    %155 = arith.subf %145, %154 : vector<16x32xf32>
    %156 = arith.mulf %155, %155 : vector<16x32xf32>
    %cst_75 = arith.constant dense<0.000000e+00> : vector<16xf32>
    %157 = vector.multi_reduction <add>, %156, %cst_75 [1] : vector<16x32xf32> to vector<16xf32>
    %158 = vector.shape_cast %157 : vector<16xf32> to vector<16x1xf32>
    %cst_76 = arith.constant 3.200000e+01 : f32
    %159 = vector.broadcast %cst_76 : f32 to vector<16x1xf32>
    %160 = arith.divf %158, %159 : vector<16x1xf32>
    %cst_77 = arith.constant 9.99999996E-13 : f32
    %161 = vector.broadcast %cst_77 : f32 to vector<16x1xf32>
    %162 = arith.addf %160, %161 : vector<16x1xf32>
    %163 = math.rsqrt %162 : vector<16x1xf32>
    %164 = vector.broadcast %163 : vector<16x1xf32> to vector<16x32xf32>
    %165 = arith.mulf %155, %164 : vector<16x32xf32>
    %166 = vector.broadcast %147 : vector<1x32xf32> to vector<16x32xf32>
    %167 = arith.mulf %165, %166 : vector<16x32xf32>
    %168 = vector.broadcast %149 : vector<1x32xf32> to vector<16x32xf32>
    %169 = arith.addf %167, %168 : vector<16x32xf32>
    %c1 = arith.constant 1 : index
    %c0_78 = arith.constant 0 : index
    %c0_79 = arith.constant 0 : index
    %170 = vector.load %arg5[%c1, %c0_78, %c0_79] : memref<2x32x96xf32, #tpu.memory_space<vmem>>, vector<1x32x96xf32>
    %171 = vector.shape_cast %170 : vector<1x32x96xf32> to vector<32x96xf32>
    %c1_80 = arith.constant 1 : index
    %c0_81 = arith.constant 0 : index
    %c0_82 = arith.constant 0 : index
    %172 = vector.load %arg6[%c1_80, %c0_81, %c0_82] : memref<2x1x96xf32, #tpu.memory_space<vmem>>, vector<1x1x96xf32>
    %173 = vector.shape_cast %172 : vector<1x1x96xf32> to vector<1x96xf32>
    %c1_83 = arith.constant 1 : index
    %c0_84 = arith.constant 0 : index
    %c0_85 = arith.constant 0 : index
    %174 = vector.load %arg7[%c1_83, %c0_84, %c0_85] : memref<2x32x32xf32, #tpu.memory_space<vmem>>, vector<1x32x32xf32>
    %175 = vector.shape_cast %174 : vector<1x32x32xf32> to vector<32x32xf32>
    %c1_86 = arith.constant 1 : index
    %c0_87 = arith.constant 0 : index
    %c0_88 = arith.constant 0 : index
    %176 = vector.load %arg8[%c1_86, %c0_87, %c0_88] : memref<2x1x32xf32, #tpu.memory_space<vmem>>, vector<1x1x32xf32>
    %177 = vector.shape_cast %176 : vector<1x1x32xf32> to vector<1x32xf32>
    %cst_89 = arith.constant dense<0.000000e+00> : vector<16x96xf32>
    %178 = tpu.matmul %169, %171, %cst_89 {dimension_numbers = #tpu.dot_dimension_numbers<[1], [0], [0], [1], [0, 0, 1, 1], [], []>} : vector<16x32xf32>, vector<32x96xf32>, vector<16x96xf32> -> vector<16x96xf32>
    %179 = vector.broadcast %173 : vector<1x96xf32> to vector<16x96xf32>
    %180 = arith.addf %178, %179 : vector<16x96xf32>
    %181 = vector.extract_strided_slice %180 {offsets = [0, 0], sizes = [16, 16], strides = [1, 1]} : vector<16x96xf32> to vector<16x16xf32>
    %182 = vector.shape_cast %181 : vector<16x16xf32> to vector<2x8x16xf32>
    %cst_90 = arith.constant 2.500000e-01 : f32
    %183 = vector.broadcast %cst_90 : f32 to vector<2x8x16xf32>
    %184 = arith.mulf %182, %183 : vector<2x8x16xf32>
    %185 = vector.extract_strided_slice %180 {offsets = [0, 32], sizes = [16, 16], strides = [1, 1]} : vector<16x96xf32> to vector<16x16xf32>
    %186 = vector.shape_cast %185 : vector<16x16xf32> to vector<2x8x16xf32>
    %187 = vector.extract_strided_slice %180 {offsets = [0, 64], sizes = [16, 16], strides = [1, 1]} : vector<16x96xf32> to vector<16x16xf32>
    %188 = vector.shape_cast %187 : vector<16x16xf32> to vector<2x8x16xf32>
    "tpu.trace_start"() <{level = 10 : i32, message = "bqd,bkd->bqk"}> : () -> ()
    %cst_91 = arith.constant dense<0.000000e+00> : vector<2x8x8xf32>
    %189 = tpu.matmul %184, %186, %cst_91 {dimension_numbers = #tpu.dot_dimension_numbers<[2], [2], [1], [1], [0, 0, 0, 1, 1, 1], [0], [0]>} : vector<2x8x16xf32>, vector<2x8x16xf32>, vector<2x8x8xf32> -> vector<2x8x8xf32>
    "tpu.trace_stop"() : () -> ()
    %190 = vector.broadcast %28 : vector<2x1x8xf32> to vector<2x8x8xf32>
    %191 = arith.addf %189, %190 : vector<2x8x8xf32>
    %cst_92 = arith.constant dense<0xFF800000> : vector<2x8xf32>
    %192 = vector.multi_reduction <maximumf>, %191, %cst_92 [2] : vector<2x8x8xf32> to vector<2x8xf32>
    %193 = vector.shape_cast %192 : vector<2x8xf32> to vector<2x8x1xf32>
    %194 = vector.broadcast %193 : vector<2x8x1xf32> to vector<2x8x8xf32>
    %195 = arith.subf %191, %194 : vector<2x8x8xf32>
    %196 = math.exp %195 : vector<2x8x8xf32>
    %cst_93 = arith.constant dense<0.000000e+00> : vector<2x8xf32>
    %197 = vector.multi_reduction <add>, %196, %cst_93 [2] : vector<2x8x8xf32> to vector<2x8xf32>
    %198 = vector.shape_cast %197 : vector<2x8xf32> to vector<2x8x1xf32>
    %199 = tpu.reciprocal %198 {approx = true} : vector<2x8x1xf32> -> vector<2x8x1xf32>
    %200 = vector.broadcast %199 : vector<2x8x1xf32> to vector<2x8x8xf32>
    %201 = arith.mulf %196, %200 : vector<2x8x8xf32>
    "tpu.trace_start"() <{level = 10 : i32, message = "bqk,bkd->bqd"}> : () -> ()
    %cst_94 = arith.constant dense<0.000000e+00> : vector<2x8x16xf32>
    %202 = tpu.matmul %201, %188, %cst_94 {dimension_numbers = #tpu.dot_dimension_numbers<[2], [1], [1], [2], [0, 0, 0, 1, 1, 2], [0], [0]>} : vector<2x8x8xf32>, vector<2x8x16xf32>, vector<2x8x16xf32> -> vector<2x8x16xf32>
    "tpu.trace_stop"() : () -> ()
    %203 = vector.shape_cast %202 : vector<2x8x16xf32> to vector<16x16xf32>
    %204 = vector.extract_strided_slice %175 {offsets = [0, 0], sizes = [16, 32], strides = [1, 1]} : vector<32x32xf32> to vector<16x32xf32>
    %cst_95 = arith.constant dense<0.000000e+00> : vector<16x32xf32>
    %205 = tpu.matmul %203, %204, %cst_95 {dimension_numbers = #tpu.dot_dimension_numbers<[1], [0], [0], [1], [0, 0, 1, 1], [], []>} : vector<16x16xf32>, vector<16x32xf32>, vector<16x32xf32> -> vector<16x32xf32>
    %206 = vector.extract_strided_slice %180 {offsets = [0, 16], sizes = [16, 16], strides = [1, 1]} : vector<16x96xf32> to vector<16x16xf32>
    %207 = vector.shape_cast %206 : vector<16x16xf32> to vector<2x8x16xf32>
    %cst_96 = arith.constant 2.500000e-01 : f32
    %208 = vector.broadcast %cst_96 : f32 to vector<2x8x16xf32>
    %209 = arith.mulf %207, %208 : vector<2x8x16xf32>
    %210 = vector.extract_strided_slice %180 {offsets = [0, 48], sizes = [16, 16], strides = [1, 1]} : vector<16x96xf32> to vector<16x16xf32>
    %211 = vector.shape_cast %210 : vector<16x16xf32> to vector<2x8x16xf32>
    %212 = vector.extract_strided_slice %180 {offsets = [0, 80], sizes = [16, 16], strides = [1, 1]} : vector<16x96xf32> to vector<16x16xf32>
    %213 = vector.shape_cast %212 : vector<16x16xf32> to vector<2x8x16xf32>
    "tpu.trace_start"() <{level = 10 : i32, message = "bqd,bkd->bqk"}> : () -> ()
    %cst_97 = arith.constant dense<0.000000e+00> : vector<2x8x8xf32>
    %214 = tpu.matmul %209, %211, %cst_97 {dimension_numbers = #tpu.dot_dimension_numbers<[2], [2], [1], [1], [0, 0, 0, 1, 1, 1], [0], [0]>} : vector<2x8x16xf32>, vector<2x8x16xf32>, vector<2x8x8xf32> -> vector<2x8x8xf32>
    "tpu.trace_stop"() : () -> ()
    %215 = vector.broadcast %28 : vector<2x1x8xf32> to vector<2x8x8xf32>
    %216 = arith.addf %214, %215 : vector<2x8x8xf32>
    %cst_98 = arith.constant dense<0xFF800000> : vector<2x8xf32>
    %217 = vector.multi_reduction <maximumf>, %216, %cst_98 [2] : vector<2x8x8xf32> to vector<2x8xf32>
    %218 = vector.shape_cast %217 : vector<2x8xf32> to vector<2x8x1xf32>
    %219 = vector.broadcast %218 : vector<2x8x1xf32> to vector<2x8x8xf32>
    %220 = arith.subf %216, %219 : vector<2x8x8xf32>
    %221 = math.exp %220 : vector<2x8x8xf32>
    %cst_99 = arith.constant dense<0.000000e+00> : vector<2x8xf32>
    %222 = vector.multi_reduction <add>, %221, %cst_99 [2] : vector<2x8x8xf32> to vector<2x8xf32>
    %223 = vector.shape_cast %222 : vector<2x8xf32> to vector<2x8x1xf32>
    %224 = tpu.reciprocal %223 {approx = true} : vector<2x8x1xf32> -> vector<2x8x1xf32>
    %225 = vector.broadcast %224 : vector<2x8x1xf32> to vector<2x8x8xf32>
    %226 = arith.mulf %221, %225 : vector<2x8x8xf32>
    "tpu.trace_start"() <{level = 10 : i32, message = "bqk,bkd->bqd"}> : () -> ()
    %cst_100 = arith.constant dense<0.000000e+00> : vector<2x8x16xf32>
    %227 = tpu.matmul %226, %213, %cst_100 {dimension_numbers = #tpu.dot_dimension_numbers<[2], [1], [1], [2], [0, 0, 0, 1, 1, 2], [0], [0]>} : vector<2x8x8xf32>, vector<2x8x16xf32>, vector<2x8x16xf32> -> vector<2x8x16xf32>
    "tpu.trace_stop"() : () -> ()
    %228 = vector.shape_cast %227 : vector<2x8x16xf32> to vector<16x16xf32>
    %229 = vector.extract_strided_slice %175 {offsets = [16, 0], sizes = [16, 32], strides = [1, 1]} : vector<32x32xf32> to vector<16x32xf32>
    %cst_101 = arith.constant dense<0.000000e+00> : vector<16x32xf32>
    %230 = tpu.matmul %228, %229, %cst_101 {dimension_numbers = #tpu.dot_dimension_numbers<[1], [0], [0], [1], [0, 0, 1, 1], [], []>} : vector<16x16xf32>, vector<16x32xf32>, vector<16x32xf32> -> vector<16x32xf32>
    %231 = arith.addf %205, %230 : vector<16x32xf32>
    %232 = vector.broadcast %177 : vector<1x32xf32> to vector<16x32xf32>
    %233 = arith.addf %231, %232 : vector<16x32xf32>
    %234 = arith.addf %233, %169 : vector<16x32xf32>
    %c1_102 = arith.constant 1 : index
    %c0_103 = arith.constant 0 : index
    %c0_104 = arith.constant 0 : index
    %235 = vector.load %arg9[%c1_102, %c0_103, %c0_104] : memref<2x1x32xf32, #tpu.memory_space<vmem>>, vector<1x1x32xf32>
    %236 = vector.shape_cast %235 : vector<1x1x32xf32> to vector<1x32xf32>
    %c1_105 = arith.constant 1 : index
    %c0_106 = arith.constant 0 : index
    %c0_107 = arith.constant 0 : index
    %237 = vector.load %arg10[%c1_105, %c0_106, %c0_107] : memref<2x1x32xf32, #tpu.memory_space<vmem>>, vector<1x1x32xf32>
    %238 = vector.shape_cast %237 : vector<1x1x32xf32> to vector<1x32xf32>
    %cst_108 = arith.constant dense<0.000000e+00> : vector<16xf32>
    %239 = vector.multi_reduction <add>, %234, %cst_108 [1] : vector<16x32xf32> to vector<16xf32>
    %240 = vector.shape_cast %239 : vector<16xf32> to vector<16x1xf32>
    %cst_109 = arith.constant 3.200000e+01 : f32
    %241 = vector.broadcast %cst_109 : f32 to vector<16x1xf32>
    %242 = arith.divf %240, %241 : vector<16x1xf32>
    %243 = vector.broadcast %242 : vector<16x1xf32> to vector<16x32xf32>
    %244 = arith.subf %234, %243 : vector<16x32xf32>
    %245 = arith.mulf %244, %244 : vector<16x32xf32>
    %cst_110 = arith.constant dense<0.000000e+00> : vector<16xf32>
    %246 = vector.multi_reduction <add>, %245, %cst_110 [1] : vector<16x32xf32> to vector<16xf32>
    %247 = vector.shape_cast %246 : vector<16xf32> to vector<16x1xf32>
    %cst_111 = arith.constant 3.200000e+01 : f32
    %248 = vector.broadcast %cst_111 : f32 to vector<16x1xf32>
    %249 = arith.divf %247, %248 : vector<16x1xf32>
    %cst_112 = arith.constant 9.99999996E-13 : f32
    %250 = vector.broadcast %cst_112 : f32 to vector<16x1xf32>
    %251 = arith.addf %249, %250 : vector<16x1xf32>
    %252 = math.rsqrt %251 : vector<16x1xf32>
    %253 = vector.broadcast %252 : vector<16x1xf32> to vector<16x32xf32>
    %254 = arith.mulf %244, %253 : vector<16x32xf32>
    %255 = vector.broadcast %236 : vector<1x32xf32> to vector<16x32xf32>
    %256 = arith.mulf %254, %255 : vector<16x32xf32>
    %257 = vector.broadcast %238 : vector<1x32xf32> to vector<16x32xf32>
    %258 = arith.addf %256, %257 : vector<16x32xf32>
    %c1_113 = arith.constant 1 : index
    %c0_114 = arith.constant 0 : index
    %c0_115 = arith.constant 0 : index
    %259 = vector.load %arg11[%c1_113, %c0_114, %c0_115] : memref<2x32x64xf32, #tpu.memory_space<vmem>>, vector<1x32x64xf32>
    %260 = vector.shape_cast %259 : vector<1x32x64xf32> to vector<32x64xf32>
    %cst_116 = arith.constant dense<0.000000e+00> : vector<16x64xf32>
    %261 = tpu.matmul %258, %260, %cst_116 {dimension_numbers = #tpu.dot_dimension_numbers<[1], [0], [0], [1], [0, 0, 1, 1], [], []>} : vector<16x32xf32>, vector<32x64xf32>, vector<16x64xf32> -> vector<16x64xf32>
    %c1_117 = arith.constant 1 : index
    %c0_118 = arith.constant 0 : index
    %c0_119 = arith.constant 0 : index
    %262 = vector.load %arg12[%c1_117, %c0_118, %c0_119] : memref<2x1x64xf32, #tpu.memory_space<vmem>>, vector<1x1x64xf32>
    %263 = vector.shape_cast %262 : vector<1x1x64xf32> to vector<1x64xf32>
    %264 = vector.broadcast %263 : vector<1x64xf32> to vector<16x64xf32>
    %265 = arith.addf %261, %264 : vector<16x64xf32>
    %cst_120 = arith.constant 5.000000e-01 : f32
    %266 = vector.broadcast %cst_120 : f32 to vector<16x64xf32>
    %267 = arith.mulf %266, %265 : vector<16x64xf32>
    %cst_121 = arith.constant 4.471500e-02 : f32
    %268 = vector.broadcast %cst_121 : f32 to vector<16x64xf32>
    %269 = arith.mulf %268, %265 : vector<16x64xf32>
    %270 = arith.mulf %269, %265 : vector<16x64xf32>
    %271 = arith.mulf %270, %265 : vector<16x64xf32>
    %272 = arith.addf %265, %271 : vector<16x64xf32>
    %cst_122 = arith.constant 0.797884583 : f32
    %273 = vector.broadcast %cst_122 : f32 to vector<16x64xf32>
    %274 = arith.mulf %273, %272 : vector<16x64xf32>
    %275 = math.tanh %274 : vector<16x64xf32>
    %cst_123 = arith.constant 1.000000e+00 : f32
    %276 = vector.broadcast %cst_123 : f32 to vector<16x64xf32>
    %277 = arith.addf %276, %275 : vector<16x64xf32>
    %278 = arith.mulf %267, %277 : vector<16x64xf32>
    %c1_124 = arith.constant 1 : index
    %c0_125 = arith.constant 0 : index
    %c0_126 = arith.constant 0 : index
    %279 = vector.load %arg13[%c1_124, %c0_125, %c0_126] : memref<2x64x32xf32, #tpu.memory_space<vmem>>, vector<1x64x32xf32>
    %280 = vector.shape_cast %279 : vector<1x64x32xf32> to vector<64x32xf32>
    %cst_127 = arith.constant dense<0.000000e+00> : vector<16x32xf32>
    %281 = tpu.matmul %278, %280, %cst_127 {dimension_numbers = #tpu.dot_dimension_numbers<[1], [0], [0], [1], [0, 0, 1, 1], [], []>} : vector<16x64xf32>, vector<64x32xf32>, vector<16x32xf32> -> vector<16x32xf32>
    %c1_128 = arith.constant 1 : index
    %c0_129 = arith.constant 0 : index
    %c0_130 = arith.constant 0 : index
    %282 = vector.load %arg14[%c1_128, %c0_129, %c0_130] : memref<2x1x32xf32, #tpu.memory_space<vmem>>, vector<1x1x32xf32>
    %283 = vector.shape_cast %282 : vector<1x1x32xf32> to vector<1x32xf32>
    %284 = vector.broadcast %283 : vector<1x32xf32> to vector<16x32xf32>
    %285 = arith.addf %281, %284 : vector<16x32xf32>
    %286 = arith.addf %285, %258 : vector<16x32xf32>
    %c1_131 = arith.constant 1 : index
    %c0_132 = arith.constant 0 : index
    %c0_133 = arith.constant 0 : index
    %287 = vector.load %arg15[%c1_131, %c0_132, %c0_133] : memref<2x1x32xf32, #tpu.memory_space<vmem>>, vector<1x1x32xf32>
    %288 = vector.shape_cast %287 : vector<1x1x32xf32> to vector<1x32xf32>
    %c1_134 = arith.constant 1 : index
    %c0_135 = arith.constant 0 : index
    %c0_136 = arith.constant 0 : index
    %289 = vector.load %arg16[%c1_134, %c0_135, %c0_136] : memref<2x1x32xf32, #tpu.memory_space<vmem>>, vector<1x1x32xf32>
    %290 = vector.shape_cast %289 : vector<1x1x32xf32> to vector<1x32xf32>
    %cst_137 = arith.constant dense<0.000000e+00> : vector<16xf32>
    %291 = vector.multi_reduction <add>, %286, %cst_137 [1] : vector<16x32xf32> to vector<16xf32>
    %292 = vector.shape_cast %291 : vector<16xf32> to vector<16x1xf32>
    %cst_138 = arith.constant 3.200000e+01 : f32
    %293 = vector.broadcast %cst_138 : f32 to vector<16x1xf32>
    %294 = arith.divf %292, %293 : vector<16x1xf32>
    %295 = vector.broadcast %294 : vector<16x1xf32> to vector<16x32xf32>
    %296 = arith.subf %286, %295 : vector<16x32xf32>
    %297 = arith.mulf %296, %296 : vector<16x32xf32>
    %cst_139 = arith.constant dense<0.000000e+00> : vector<16xf32>
    %298 = vector.multi_reduction <add>, %297, %cst_139 [1] : vector<16x32xf32> to vector<16xf32>
    %299 = vector.shape_cast %298 : vector<16xf32> to vector<16x1xf32>
    %cst_140 = arith.constant 3.200000e+01 : f32
    %300 = vector.broadcast %cst_140 : f32 to vector<16x1xf32>
    %301 = arith.divf %299, %300 : vector<16x1xf32>
    %cst_141 = arith.constant 9.99999996E-13 : f32
    %302 = vector.broadcast %cst_141 : f32 to vector<16x1xf32>
    %303 = arith.addf %301, %302 : vector<16x1xf32>
    %304 = math.rsqrt %303 : vector<16x1xf32>
    %305 = vector.broadcast %304 : vector<16x1xf32> to vector<16x32xf32>
    %306 = arith.mulf %296, %305 : vector<16x32xf32>
    %307 = vector.broadcast %288 : vector<1x32xf32> to vector<16x32xf32>
    %308 = arith.mulf %306, %307 : vector<16x32xf32>
    %309 = vector.broadcast %290 : vector<1x32xf32> to vector<16x32xf32>
    %310 = arith.addf %308, %309 : vector<16x32xf32>
    %c0_142 = arith.constant 0 : index
    %c0_143 = arith.constant 0 : index
    %311 = vector.load %arg17[%c0_142, %c0_143] : memref<32x16xf32, #tpu.memory_space<vmem>>, vector<32x16xf32>
    %cst_144 = arith.constant dense<0.000000e+00> : vector<16x16xf32>
    %312 = tpu.matmul %310, %311, %cst_144 {dimension_numbers = #tpu.dot_dimension_numbers<[1], [0], [0], [1], [0, 0, 1, 1], [], []>} : vector<16x32xf32>, vector<32x16xf32>, vector<16x16xf32> -> vector<16x16xf32>
    %c0_145 = arith.constant 0 : index
    %c0_146 = arith.constant 0 : index
    %313 = vector.load %arg18[%c0_145, %c0_146] : memref<16x16xf32, #tpu.memory_space<vmem>>, vector<16x16xf32>
    tpu.vector_store %arg18[%c0_145, %c0_146], %312 {strides = array<i32>} : memref<16x16xf32, #tpu.memory_space<vmem>>, vector<16x16xf32>,
    return
  }
  func.func @transform_0(%arg0: i32) -> (i32, i32) {
    %c0_i32 = arith.constant 0 : i32
    %c0_i32_0 = arith.constant 0 : i32
    %c0_i32_1 = arith.constant 0 : i32
    return %c0_i32, %c0_i32_0 : i32, i32
  }
  func.func @transform_1(%arg0: i32) -> (i32, i32) {
    %c0_i32 = arith.constant 0 : i32
    %c0_i32_0 = arith.constant 0 : i32
    %c0_i32_1 = arith.constant 0 : i32
    return %c0_i32, %c0_i32_0 : i32, i32
  }
  func.func @transform_2(%arg0: i32) -> (i32, i32) {
    %c0_i32 = arith.constant 0 : i32
    %c0_i32_0 = arith.constant 0 : i32
    %c0_i32_1 = arith.constant 0 : i32
    return %c0_i32, %c0_i32_0 : i32, i32
  }
  func.func @transform_3(%arg0: i32) -> (i32, i32) {
    %c0_i32 = arith.constant 0 : i32
    %c0_i32_0 = arith.constant 0 : i32
    %c0_i32_1 = arith.constant 0 : i32
    return %c0_i32, %c0_i32_0 : i32, i32
  }
  func.func @transform_4(%arg0: i32) -> (i32, i32, i32) {
    %c0_i32 = arith.constant 0 : i32
    %c0_i32_0 = arith.constant 0 : i32
    %c0_i32_1 = arith.constant 0 : i32
    %c0_i32_2 = arith.constant 0 : i32
    return %c0_i32, %c0_i32_0, %c0_i32_1 : i32, i32, i32
  }
  func.func @transform_5(%arg0: i32) -> (i32, i32, i32) {
    %c0_i32 = arith.constant 0 : i32
    %c0_i32_0 = arith.constant 0 : i32
    %c0_i32_1 = arith.constant 0 : i32
    %c0_i32_2 = arith.constant 0 : i32
    return %c0_i32, %c0_i32_0, %c0_i32_1 : i32, i32, i32
  }
  func.func @transform_6(%arg0: i32) -> (i32, i32, i32) {
    %c0_i32 = arith.constant 0 : i32
    %c0_i32_0 = arith.constant 0 : i32
    %c0_i32_1 = arith.constant 0 : i32
    %c0_i32_2 = arith.constant 0 : i32
    return %c0_i32, %c0_i32_0, %c0_i32_1 : i32, i32, i32
  }
  func.func @transform_7(%arg0: i32) -> (i32, i32, i32) {
    %c0_i32 = arith.constant 0 : i32
    %c0_i32_0 = arith.constant 0 : i32
    %c0_i32_1 = arith.constant 0 : i32
    %c0_i32_2 = arith.constant 0 : i32
    return %c0_i32, %c0_i32_0, %c0_i32_1 : i32, i32, i32
  }
  func.func @transform_8(%arg0: i32) -> (i32, i32, i32) {
    %c0_i32 = arith.constant 0 : i32
    %c0_i32_0 = arith.constant 0 : i32
    %c0_i32_1 = arith.constant 0 : i32
    %c0_i32_2 = arith.constant 0 : i32
    return %c0_i32, %c0_i32_0, %c0_i32_1 : i32, i32, i32
  }
  func.func @transform_9(%arg0: i32) -> (i32, i32, i32) {
    %c0_i32 = arith.constant 0 : i32
    %c0_i32_0 = arith.constant 0 : i32
    %c0_i32_1 = arith.constant 0 : i32
    %c0_i32_2 = arith.constant 0 : i32
    return %c0_i32, %c0_i32_0, %c0_i32_1 : i32, i32, i32
  }
  func.func @transform_10(%arg0: i32) -> (i32, i32, i32) {
    %c0_i32 = arith.constant 0 : i32
    %c0_i32_0 = arith.constant 0 : i32
    %c0_i32_1 = arith.constant 0 : i32
    %c0_i32_2 = arith.constant 0 : i32
    return %c0_i32, %c0_i32_0, %c0_i32_1 : i32, i32, i32
  }
  func.func @transform_11(%arg0: i32) -> (i32, i32, i32) {
    %c0_i32 = arith.constant 0 : i32
    %c0_i32_0 = arith.constant 0 : i32
    %c0_i32_1 = arith.constant 0 : i32
    %c0_i32_2 = arith.constant 0 : i32
    return %c0_i32, %c0_i32_0, %c0_i32_1 : i32, i32, i32
  }
  func.func @transform_12(%arg0: i32) -> (i32, i32, i32) {
    %c0_i32 = arith.constant 0 : i32
    %c0_i32_0 = arith.constant 0 : i32
    %c0_i32_1 = arith.constant 0 : i32
    %c0_i32_2 = arith.constant 0 : i32
    return %c0_i32, %c0_i32_0, %c0_i32_1 : i32, i32, i32
  }
  func.func @transform_13(%arg0: i32) -> (i32, i32, i32) {
    %c0_i32 = arith.constant 0 : i32
    %c0_i32_0 = arith.constant 0 : i32
    %c0_i32_1 = arith.constant 0 : i32
    %c0_i32_2 = arith.constant 0 : i32
    return %c0_i32, %c0_i32_0, %c0_i32_1 : i32, i32, i32
  }
  func.func @transform_14(%arg0: i32) -> (i32, i32, i32) {
    %c0_i32 = arith.constant 0 : i32
    %c0_i32_0 = arith.constant 0 : i32
    %c0_i32_1 = arith.constant 0 : i32
    %c0_i32_2 = arith.constant 0 : i32
    return %c0_i32, %c0_i32_0, %c0_i32_1 : i32, i32, i32
  }
  func.func @transform_15(%arg0: i32) -> (i32, i32, i32) {
    %c0_i32 = arith.constant 0 : i32
    %c0_i32_0 = arith.constant 0 : i32
    %c0_i32_1 = arith.constant 0 : i32
    %c0_i32_2 = arith.constant 0 : i32
    return %c0_i32, %c0_i32_0, %c0_i32_1 : i32, i32, i32
  }
  func.func @transform_16(%arg0: i32) -> (i32, i32) {
    %c0_i32 = arith.constant 0 : i32
    %c0_i32_0 = arith.constant 0 : i32
    %c0_i32_1 = arith.constant 0 : i32
    return %c0_i32, %c0_i32_0 : i32, i32
  }
  func.func @transform_17(%arg0: i32) -> (i32, i32) {
    %c0_i32 = arith.constant 0 : i32
    %c0_i32_0 = arith.constant 0 : i32
    %c0_i32_1 = arith.constant 0 : i32
    return %c0_i32, %c0_i32_0 : i32, i32
  }
}

</mosaic_0001>

<bundles_post_ra>
// kernel: tpu_custom_call.1
= control target key start
LH: loop header
LB: loop body
LE: loop exit
PB: predicated region body
PF: predicated region fallthrough
CT: control target
= control target key end

     0   :  { %s2028_s0 = inlined_call_operand.vmem [shape: f32[16,32], index: 0, kind: input, shape index: {}]   ;;  %s2029_s1 = inlined_call_operand.vmem [shape: f32[2,8], index: 1, kind: input, shape index: {}]   ;;  %s2030_s2 = inlined_call_operand.vmem [shape: f32[1,32], index: 2, kind: input, shape index: {}]   ;;  %s2031_s3 = inlined_call_operand.vmem [shape: f32[1,32], index: 3, kind: input, shape index: {}]   ;;  %s2032_s4 = inlined_call_operand.vmem [shape: f32[2,32,96], index: 4, kind: input, shape index: {}]   ;;  %s2033_s5 = inlined_call_operand.vmem [shape: f32[2,1,96], index: 5, kind: input, shape index: {}]   ;;  %s2034_s6 = inlined_call_operand.vmem [shape: f32[2,32,32], index: 6, kind: input, shape index: {}]   ;;  %s2035_s7 = inlined_call_operand.vmem [shape: f32[2,1,32], index: 7, kind: input, shape index: {}]   ;;  %s2036_s8 = inlined_call_operand.vmem [shape: f32[2,1,32], index: 8, kind: input, shape index: {}]   ;;  %s2037_s9 = inlined_call_operand.vmem [shape: f32[2,1,32], index: 9, kind: input, shape index: {}]   ;;  %s2038_s10 = inlined_call_operand.vmem [shape: f32[2,32,64], index: 10, kind: input, shape index: {}]   ;;  %s2039_s11 = inlined_call_operand.vmem [shape: f32[2,1,64], index: 11, kind: input, shape index: {}]   ;;  %s2040_s12 = inlined_call_operand.vmem [shape: f32[2,64,32], index: 12, kind: input, shape index: {}]   ;;  %s2041_s13 = inlined_call_operand.vmem [shape: f32[2,1,32], index: 13, kind: input, shape index: {}]   ;;  %s2042_s14 = inlined_call_operand.vmem [shape: f32[2,1,32], index: 14, kind: input, shape index: {}]   ;;  %s2043_s15 = inlined_call_operand.vmem [shape: f32[2,1,32], index: 15, kind: input, shape index: {}]   ;;  %s2044_s16 = inlined_call_operand.vmem [shape: f32[32,16], index: 16, kind: input, shape index: {}]   ;;  %s2045_s17 = inlined_call_operand.hbm [shape: f32[16,16], index: 17, kind: output, shape index: {}]  }
   0x1   :  { %2047 = sst [smem:[#allocation5_spill]] %s2028_s0 }
   0x2   :  { %2048 = sst [smem:[#allocation6_spill]] %s2029_s1 }
   0x3   :  { %s2049_s26 = sld [smem:[#allocation5_spill]]  ;;  %vm61_vm0 = vcmask 261120  }
   0x9   :  { %v57_v0 = vld [vmem:[%s2049_s26] sm:$0xff]  ;;  %v58_v2 = vld [vmem:[%s2049_s26 + $0x8] sm:$0xff] }
   0xa   :  { %v62_v1 = vsel %vm61_vm0, %v57_v0, 0.0  ;;  %v65_v3 = vsel %vm61_vm0, %v58_v2, 0.0 }
   0xb   :  { %63 = vadd.xlane.f32.xlu0 %v62_v1 }
   0xc   :  { %22 = vsyncpa [#allocation3], 0  ;;  %v1561_v4 = vmov 32.0   ;;  %v133_v21 = vld [vmem:[%s2032_s4 + $0x18] sm:$0xff]  ;;  %v132_v22 = vld [vmem:[%s2032_s4 + $0x10] sm:$0xff]  ;;  %s1562_s26 = smov 80  }
   0xd   :  { %1473 = vrcp.f32 %v1561_v4  ;;  %161 = vmatpush.msra.mxu0 %v133_v21  ;;  %v131_v23 = vld [vmem:[%s2032_s4 + $0x8] sm:$0xff]  ;;  %v130_v24 = vld [vmem:[%s2032_s4] sm:$0xff]  ;;  %s1563_s27 = smov 96   ;;  %s1564_s28 = smov 112   ;;  %vm183_vm8 = vcmask 130048   ;;  %vm237_vm9 = vcmask 64512  }
   0xe   :  { %v1455_v39 = vld [vmem:[%s2030_s2] ss:$0 sm:$0xff]  ;;  %s2050_s30 = sld [smem:[#allocation6_spill]]  ;;  %s1565_s18 = smov 64  }
   0xf   :  { %162 = vmatpush.msra.mxu0 %v132_v22  ;;  %v1456_v43 = vld [vmem:[%s2031_s3] ss:$0 sm:$0xff]  ;;  %s1566_s19 = smov 48   ;;  %s1569_s2 = smov 8  }
  0x10   :  { %v1457_v53 = vld [vmem:[%s2033_s5] ss:$0 sm:$0xff] }
  0x11   :  { %163 = vmatpush.msra.mxu0 %v131_v23 }
  0x13   :  { %66 = vadd.xlane.f32.xlu0 %v65_v3  ;;  %v1474_v5 = vpop.eup %1473  ;;  %164 = vmatpush.msra.mxu0 %v130_v24 }
  0x14   :  { %v69_v6 = vmul.f32 32.0, %v1474_v5  ;;  %vm73_vm1 = vweird.f32 %v1474_v5 }
  0x16   :  { %v70_v7 = vsub.f32 1.0, %v69_v6 }
  0x18   :  { %v71_v8 = vmul.f32 %v1474_v5, %v70_v7 }
  0x1a   :  { %v72_v9 = vadd.f32 %v1474_v5, %v71_v8 }
  0x1c   :  { %v1668_v10 = vsel %vm73_vm1, %v1474_v5, %v72_v9  ;;  %vm630_vm1 = vcmask 523264  }
  0x7e   :  { %v64_v11 = vpop.xlane.xlu0 %63 }
  0x7f   :  { %v75_v12 = vmul.f32 %v1668_v10, %v64_v11 }
  0x81   :  { %v77_v13 = vsub.f32 %v57_v0, %v75_v12 }
  0x83   :  { %v79_v14 = vmul.f32 %v77_v13, %v77_v13 }
  0x85   :  { %v81_v15 = vsel %vm61_vm0, %v79_v14, 0.0 }
  0x86   :  { %82 = vadd.xlane.f32.xlu1 %v81_v15  ;;  %v67_v16 = vpop.xlane.xlu0 %66 }
  0x87   :  { %v76_v17 = vmul.f32 %v1668_v10, %v67_v16 }
  0x89   :  { %v78_v18 = vsub.f32 %v58_v2, %v76_v17  ;;  %v123_v2 = vld [vmem:[%s2050_s30] sm:$0x3] }
  0x8a   :  { %v124_v3 = vsub.f32 1.0, %v123_v2 }
  0x8b   :  { %v80_v19 = vmul.f32 %v78_v18, %v78_v18 }
  0x8c   :  { %v128_v4 = vmul.f32 -1e+09, %v124_v3  ;;  %v126_v6 = vrot.slane %v124_v3, 1 }
  0x8d   :  { %v84_v20 = vsel %vm61_vm0, %v80_v19, 0.0 }
  0x8e   :  { %85 = vadd.xlane.f32.xlu1 %v84_v20  ;;  %v1732_v5 = vperm.slane %v128_v4, 0  ;;  %v129_v9 = vmul.f32 -1e+09, %v126_v6  ;;  %v1458_v4 = vld [vmem:[%s2035_s7] ss:$0 sm:$0xff] }
  0x90   :  { %v1736_v12 = vperm.slane %v129_v9, 0 }
  0xf9   :  { %v83_v25 = vpop.xlane.xlu1 %82 }
  0xfa   :  { %v87_v26 = vmul.f32 %v83_v25, %v1668_v10 }
  0xfc   :  { %v89_v27 = vadd.f32 1e-12, %v87_v26 }
  0xfe   :  { %1475 = vrsqrt.f32 %v89_v27  ;;  %vm97_vm3 = vweird.f32 %v89_v27 }
 0x101   :  { %v86_v28 = vpop.xlane.xlu1 %85 }
 0x102   :  { %v88_v29 = vmul.f32 %v86_v28, %v1668_v10 }
 0x104   :  { %v1476_v30 = vpop.eup %1475  ;;  %v90_v31 = vadd.f32 1e-12, %v88_v29 }
 0x105   :  { %v92_v32 = vmul.f32 %v1476_v30, %v89_v27  ;;  %vm98_vm2 = vweird.f32 %v1476_v30 }
 0x106   :  { %1477 = vrsqrt.f32 %v90_v31  ;;  %vm99_vm4 = vmor %vm97_vm3, %vm98_vm2  ;;  %vm107_vm5 = vweird.f32 %v90_v31 }
 0x107   :  { %v93_v33 = vmul.f32 %v1476_v30, %v92_v32 }
 0x109   :  { %v94_v34 = vmul.f32 0.5, %v93_v33 }
 0x10b   :  { %v95_v35 = vsub.f32 1.5, %v94_v34 }
 0x10c   :  { %v1478_v36 = vpop.eup %1477 }
 0x10d   :  { %v96_v37 = vmul.f32 %v1476_v30, %v95_v35  ;;  %v102_v38 = vmul.f32 %v1478_v36, %v90_v31  ;;  %vm108_vm6 = vweird.f32 %v1478_v36 }
 0x10e   :  { %vm109_vm7 = vmor %vm107_vm5, %vm108_vm6 }
 0x10f   :  { %v100_v40 = vsel %vm99_vm4, %v1476_v30, %v96_v37  ;;  %v103_v41 = vmul.f32 %v1478_v36, %v102_v38 }
 0x110   :  { %v111_v42 = vmul.f32 %v100_v40, %v77_v13 }
 0x111   :  { %v104_v44 = vmul.f32 0.5, %v103_v41 }
 0x112   :  { %v116_v45 = vmul.f32 %v1455_v39, %v111_v42 }
 0x113   :  { %v105_v46 = vsub.f32 1.5, %v104_v44 }
 0x114   :  { %v1694_v47 = vadd.f32 %v1456_v43, %v116_v45 }
 0x115   :  { %v106_v48 = vmul.f32 %v1478_v36, %v105_v46 }
 0x116   :  { %1362 = vmatmul.msk.f32.vlgmr.msra.gmra.mxu0 %vm61_vm0, %v1694_v47 }
 0x117   :  { %v110_v49 = vsel %vm109_vm7, %v1478_v36, %v106_v48 }
 0x118   :  { %v112_v50 = vmul.f32 %v110_v49, %v78_v18 }
 0x11a   :  { %v117_v51 = vmul.f32 %v1455_v39, %v112_v50 }
 0x11c   :  { %v1698_v52 = vadd.f32 %v1456_v43, %v117_v51 }
 0x11e   :  { %1363 = vmatmul.msk.f32.gmra.mxu0 %vm61_vm0, %v1698_v52 }
 0x193   :  { %v166_v54 = vpop.f32.mrf.mxu0 }
 0x194   :  { %v1705_v55 = vadd.f32 %v1457_v53, %v166_v54 }
 0x196   :  { %314 = vrot.lane.b32.xlu0 %v1705_v55, %s1562_s26  ;;  %181 = vrot.lane.b32.xlu2 %v1705_v55, %s1563_s27  ;;  %v172_v56 = vmul.f32 0.25, %v1705_v55 }
 0x198   :  { %312 = vrot.lane.b32.xlu1 %v172_v56, %s1564_s28 }
 0x19b   :  { %v169_v57 = vpop.f32.mrf.mxu0 }
 0x19c   :  { %v1713_v58 = vadd.f32 %v1457_v53, %v169_v57 }
 0x19e   :  { %210 = vrot.lane.b32.xlu2 %v1713_v58, %s1563_s27  ;;  %v173_v59 = vmul.f32 0.25, %v1713_v58 }
 0x1a6   :  { %342 = vrot.lane.b32.xlu2 %v1713_v58, %s1562_s26 }
 0x1ae   :  { %340 = vrot.lane.b32.xlu2 %v173_v59, %s1564_s28 }
 0x1f0   :  { %v182_v60 = vpop.permute.xlu2 %181 }
 0x1f1   :  { %1364 = vmatpush.xpose.msk.msra.mxu2 %vm183_vm8, %v182_v60  ;;  %v138_v60 = vld [vmem:[%s2034_s6 + $0x18] sm:$0xff] }
 0x1f4   :  { %1365 = vmatmul.msk.f32.vlgmr.msra.gmra.mxu2 %vm183_vm8, %v172_v56 }
 0x1f8   :  { %v211_v61 = vpop.permute.xlu2 %210 }
 0x1f9   :  { %1366 = vmatpush.xpose.msk.msrb.mxu2 %vm183_vm8, %v211_v61  ;;  %v137_v61 = vld [vmem:[%s2034_s6 + $0x10] sm:$0xff] }
 0x1fc   :  { %1367 = vmatmul.msk.f32.vlgmr.msrb.gmra.mxu2 %vm183_vm8, %v173_v59 }
 0x200   :  { %v343_v62 = vpop.permute.xlu2 %342 }
 0x201   :  { %1372 = vmatpush.xpose.msk.msra.mxu2 %vm183_vm8, %v343_v62  ;;  %v136_v62 = vld [vmem:[%s2034_s6 + $0x8] sm:$0xff] }
 0x205   :  { %462 = vmatpush.msrb.mxu2 %v138_v60 }
 0x207   :  { %463 = vmatpush.msrb.mxu2 %v137_v61 }
 0x208   :  { %v341_v63 = vpop.permute.xlu2 %340  ;;  %v315_v0 = vpop.permute.xlu0 %314 }
 0x209   :  { %1370 = vmatpush.xpose.msk.msra.mxu1 %vm183_vm8, %v315_v0  ;;  %1373 = vmatmul.msk.f32.vlgmr.msra.gmra.mxu2 %vm183_vm8, %v341_v63  ;;  %v135_v63 = vld [vmem:[%s2034_s6] sm:$0xff] }
 0x20a   :  { %v313_v1 = vpop.permute.xlu1 %312 }
 0x20c   :  { %1371 = vmatmul.msk.f32.vlgmr.msra.gmra.mxu1 %vm183_vm8, %v313_v1 }
 0x277   :  { %v206_v7 = vpop.f32.mrf.mxu2 }
 0x278   :  { %v207_v8 = vadd.f32 %v206_v7, %v1732_v5 }
 0x27a   :  { %v238_v11 = vsel %vm237_vm9, %v207_v8, -inf }
 0x27b   :  { %239 = vmax.xlane.f32.xlu1 %v238_v11 }
 0x27f   :  { %v234_v13 = vpop.f32.mrf.mxu2 }
 0x280   :  { %v235_v14 = vadd.f32 %v234_v13, %v1736_v12 }
 0x282   :  { %v241_v15 = vsel %vm237_vm9, %v235_v14, -inf }
 0x283   :  { %242 = vmax.xlane.f32.xlu2 %v241_v15 }
 0x289   :  { %v337_v16 = vpop.f32.mrf.mxu1 }
 0x28a   :  { %v338_v17 = vadd.f32 %v337_v16, %v1732_v5 }
 0x28c   :  { %v365_v18 = vpop.f32.mrf.mxu2  ;;  %v368_v19 = vsel %vm237_vm9, %v338_v17, -inf }
 0x28d   :  { %v366_v20 = vadd.f32 %v365_v18, %v1736_v12  ;;  %369 = vmax.xlane.f32.xlu0 %v368_v19 }
 0x28f   :  { %v371_v21 = vsel %vm237_vm9, %v366_v20, -inf }
 0x290   :  { %372 = vmax.xlane.f32.xlu2 %v371_v21 }
 0x294   :  { %286 = vrot.lane.b32.xlu1 %v1713_v58, %s1565_s18 }
 0x2a1   :  { %390 = vrot.lane.b32.xlu0 %v1705_v55, %s1566_s19 }
 0x2ee   :  { %v240_v25 = vpop.xlane.xlu1 %239 }
 0x2ef   :  { %v244_v30 = vsub.f32 %v207_v8, %v240_v25 }
 0x2f1   :  { %v246_v33 = vmul.f32 1.442695, %v244_v30  ;;  %v564_v30 = vld [vmem:[%s2038_s10 + $0x8] sm:$0xff] }
 0x2f6   :  { %v243_v22 = vpop.xlane.xlu2 %242 }
 0x2f7   :  { %v245_v23 = vsub.f32 %v235_v14, %v243_v22 }
 0x2f9   :  { %v248_v24 = vmul.f32 1.442695, %v245_v23 }
 0x2fb   :  { %1479 = vpow2.f32 %v248_v24 }
 0x300   :  { %v370_v26 = vpop.xlane.xlu0 %369 }
 0x301   :  { %v1480_v27 = vpop.eup %1479  ;;  %v374_v28 = vsub.f32 %v338_v17, %v370_v26 }
 0x302   :  { %v253_v29 = vsel %vm237_vm9, %v1480_v27, 0.0 }
 0x303   :  { %v376_v31 = vmul.f32 1.442695, %v374_v28  ;;  %254 = vadd.xlane.f32.xlu0 %v253_v29  ;;  %v373_v34 = vpop.xlane.xlu2 %372  ;;  %v565_v29 = vld [vmem:[%s2038_s10 + $0x10] sm:$0xff] }
 0x304   :  { %v375_v36 = vsub.f32 %v366_v20, %v373_v34 }
 0x305   :  { %1481 = vpow2.f32 %v376_v31  ;;  %v563_v31 = vld [vmem:[%s2038_s10] sm:$0xff] }
 0x306   :  { %v287_v32 = vpop.permute.xlu1 %286  ;;  %1483 = vpow2.f32 %v246_v33  ;;  %v378_v38 = vmul.f32 1.442695, %v375_v36 }
 0x307   :  { %307 = vmatpush.msra.mxu3 %v287_v32 }
 0x308   :  { %1485 = vpow2.f32 %v378_v38 }
 0x30b   :  { %v1482_v35 = vpop.eup %1481 }
 0x30c   :  { %v380_v37 = vsel %vm237_vm9, %v1482_v35, 0.0  ;;  %v1484_v39 = vpop.eup %1483 }
 0x30d   :  { %381 = vadd.xlane.f32.xlu2 %v380_v37  ;;  %v250_v41 = vsel %vm237_vm9, %v1484_v39, 0.0 }
 0x30e   :  { %v1486_v42 = vpop.eup %1485 }
 0x30f   :  { %v383_v43 = vsel %vm237_vm9, %v1486_v42, 0.0 }
 0x313   :  { %v391_v40 = vpop.permute.xlu0 %390 }
 0x314   :  { %411 = vmatpush.msrb.mxu3 %v391_v40 }
 0x315   :  { %251 = vadd.xlane.f32.xlu2 %v250_v41 }
 0x317   :  { %416 = vrot.lane.b32.xlu0 %v1713_v58, %s1566_s19 }
 0x31d   :  { %384 = vadd.xlane.f32.xlu2 %v383_v43 }
 0x335   :  { %260 = vrot.lane.b32.xlu2 %v1705_v55, %s1565_s18 }
 0x376   :  { %v255_v44 = vpop.xlane.xlu0 %254 }
 0x377   :  { %1487 = vrcp.f32 %v255_v44 }
 0x37d   :  { %v1488_v45 = vpop.eup %1487 }
 0x37e   :  { %v259_v46 = vmul.f32 %v1488_v45, %v1480_v27 }
 0x380   :  { %v382_v48 = vpop.xlane.xlu2 %381  ;;  %1369 = vmatmul.msk.f32.vlgmr.msra.gmra.mxu3 %vm237_vm9, %v259_v46  ;;  %v1459_v46 = vld [vmem:[%s2036_s8] ss:$0 sm:$0xff] }
 0x381   :  { %1489 = vrcp.f32 %v382_v48 }
 0x387   :  { %v1490_v49 = vpop.eup %1489 }
 0x388   :  { %v252_v50 = vpop.xlane.xlu2 %251  ;;  %v388_v51 = vmul.f32 %v1490_v49, %v1482_v35 }
 0x389   :  { %v417_v53 = vpop.permute.xlu0 %416  ;;  %1491 = vrcp.f32 %v252_v50 }
 0x38a   :  { %1374 = vmatmul.msk.f32.vlgmr.msrb.gmra.mxu3 %vm237_vm9, %v388_v51  ;;  %437 = vmatpush.msrb.mxu1 %v417_v53  ;;  %v1460_v51 = vld [vmem:[%s2037_s9] ss:$0 sm:$0xff] }
 0x38f   :  { %v1492_v56 = vpop.eup %1491 }
 0x390   :  { %v385_v54 = vpop.xlane.xlu2 %384  ;;  %v258_v58 = vmul.f32 %v1492_v56, %v1484_v39 }
 0x391   :  { %1493 = vrcp.f32 %v385_v54 }
 0x397   :  { %v1494_v55 = vpop.eup %1493 }
 0x398   :  { %v261_v57 = vpop.permute.xlu2 %260  ;;  %v389_v59 = vmul.f32 %v1494_v55, %v1486_v42 }
 0x399   :  { %281 = vmatpush.msrb.mxu0 %v261_v57 }
 0x39a   :  { %1368 = vmatmul.msk.f32.vlgmr.msrb.gmra.mxu0 %vm237_vm9, %v258_v58  ;;  %1375 = vmatmul.msk.f32.vlgmr.msrb.gmra.mxu1 %vm237_vm9, %v389_v59 }
 0x39b   :  { %491 = vmatpush.msra.mxu0 %v136_v62  ;;  %v625_v62 = vld [vmem:[%s2040_s12 + $0x38] sm:$0xff] }
 0x39c   :  { %645 = vmatpush.msra.mxu1 %v625_v62 }
 0x39d   :  { %492 = vmatpush.msra.mxu0 %v135_v63  ;;  %v624_v63 = vld [vmem:[%s2040_s12 + $0x30] sm:$0xff] }
 0x39e   :  { %646 = vmatpush.msra.mxu1 %v624_v63 }
 0x403   :  { %v309_v0 = vpop.f32.mrf.mxu3 }
 0x40d   :  { %v413_v1 = vpop.f32.mrf.mxu3 }
 0x40e   :  { %1376 = vmatmul.msk.f32.vlgmr.msrb.gmra.mxu2 %vm183_vm8, %v413_v1  ;;  %v622_v1 = vld [vmem:[%s2040_s12 + $0x20] sm:$0xff] }
 0x417   :  { %v283_v2 = vpop.f32.mrf.mxu0  ;;  %v439_v3 = vpop.f32.mrf.mxu1 }
 0x418   :  { %1377 = vmatmul.msk.f32.gmra.mxu2 %vm183_vm8, %v439_v3  ;;  %1378 = vmatmul.msk.f32.vlgmr.msra.gmra.mxu0 %vm183_vm8, %v283_v2  ;;  %v621_v2 = vld [vmem:[%s2040_s12 + $0x18] sm:$0xff]  ;;  %v620_v3 = vld [vmem:[%s2040_s12 + $0x10] sm:$0xff] }
 0x420   :  { %1379 = vmatmul.msk.f32.gmra.mxu0 %vm183_vm8, %v309_v0  ;;  %v623_v0 = vld [vmem:[%s2040_s12 + $0x28] sm:$0xff] }
 0x421   :  { %647 = vmatpush.msra.mxu1 %v623_v0 }
 0x423   :  { %648 = vmatpush.msra.mxu1 %v622_v1 }
 0x425   :  { %649 = vmatpush.msra.mxu1 %v621_v2 }
 0x427   :  { %650 = vmatpush.msra.mxu1 %v620_v3 }
 0x491   :  { %v465_v6 = vpop.f32.mrf.mxu2 }
 0x495   :  { %v494_v7 = vpop.f32.mrf.mxu0 }
 0x496   :  { %v495_v8 = vadd.f32 %v494_v7, %v465_v6  ;;  %v618_v6 = vld [vmem:[%s2040_s12] sm:$0xff] }
 0x497   :  { %v1461_v7 = vld [vmem:[%s2039_s11] ss:$0 sm:$0xff] }
 0x498   :  { %v503_v9 = vadd.f32 %v1458_v4, %v495_v8 }
 0x49a   :  { %v505_v11 = vadd.f32 %v503_v9, %v1694_v47 }
 0x49b   :  { %v468_v14 = vpop.f32.mrf.mxu2 }
 0x49c   :  { %v509_v13 = vsel %vm61_vm0, %v505_v11, 0.0 }
 0x49d   :  { %v497_v15 = vpop.f32.mrf.mxu0  ;;  %510 = vadd.xlane.f32.xlu1 %v509_v13 }
 0x49e   :  { %v498_v16 = vadd.f32 %v497_v15, %v468_v14 }
 0x4a0   :  { %v504_v17 = vadd.f32 %v1458_v4, %v498_v16  ;;  %v619_v4 = vld [vmem:[%s2040_s12 + $0x8] sm:$0xff] }
 0x4a1   :  { %651 = vmatpush.msra.mxu1 %v619_v4 }
 0x4a2   :  { %v506_v18 = vadd.f32 %v504_v17, %v1698_v52  ;;  %v566_v52 = vld [vmem:[%s2038_s10 + $0x18] sm:$0xff] }
 0x4a3   :  { %589 = vmatpush.msra.mxu3 %v566_v52  ;;  %652 = vmatpush.msra.mxu1 %v618_v6  ;;  %v1463_v6 = vld [vmem:[%s2042_s14] ss:$0 sm:$0xff] }
 0x4a4   :  { %v512_v19 = vsel %vm61_vm0, %v506_v18, 0.0 }
 0x4a5   :  { %513 = vadd.xlane.f32.xlu0 %v512_v19  ;;  %590 = vmatpush.msra.mxu3 %v565_v29 }
 0x4a7   :  { %591 = vmatpush.msra.mxu3 %v564_v30  ;;  %v1462_v30 = vld [vmem:[%s2041_s13] ss:$0 sm:$0xff] }
 0x4a9   :  { %592 = vmatpush.msra.mxu3 %v563_v31 }
 0x510   :  { %v511_v20 = vpop.xlane.xlu1 %510 }
 0x511   :  { %v515_v21 = vmul.f32 %v511_v20, %v1668_v10 }
 0x513   :  { %v517_v22 = vsub.f32 %v505_v11, %v515_v21 }
 0x515   :  { %v519_v23 = vmul.f32 %v517_v22, %v517_v22 }
 0x517   :  { %v521_v24 = vsel %vm61_vm0, %v519_v23, 0.0 }
 0x518   :  { %522 = vadd.xlane.f32.xlu2 %v521_v24  ;;  %v514_v47 = vpop.xlane.xlu0 %513 }
 0x519   :  { %v516_v25 = vmul.f32 %v514_v47, %v1668_v10 }
 0x51b   :  { %v518_v26 = vsub.f32 %v506_v18, %v516_v25 }
 0x51d   :  { %v520_v27 = vmul.f32 %v518_v26, %v518_v26 }
 0x51f   :  { %v524_v28 = vsel %vm61_vm0, %v520_v27, 0.0 }
 0x520   :  { %525 = vadd.xlane.f32.xlu1 %v524_v28 }
 0x58b   :  { %v523_v32 = vpop.xlane.xlu2 %522 }
 0x58c   :  { %v527_v33 = vmul.f32 %v523_v32, %v1668_v10 }
 0x58e   :  { %v529_v34 = vadd.f32 1e-12, %v527_v33 }
 0x590   :  { %1495 = vrsqrt.f32 %v529_v34  ;;  %vm537_vm11 = vweird.f32 %v529_v34 }
 0x593   :  { %v526_v35 = vpop.xlane.xlu1 %525 }
 0x594   :  { %v528_v36 = vmul.f32 %v526_v35, %v1668_v10 }
 0x596   :  { %v1496_v37 = vpop.eup %1495  ;;  %v530_v38 = vadd.f32 1e-12, %v528_v36 }
 0x597   :  { %v532_v39 = vmul.f32 %v1496_v37, %v529_v34  ;;  %vm538_vm10 = vweird.f32 %v1496_v37 }
 0x598   :  { %1497 = vrsqrt.f32 %v530_v38  ;;  %vm539_vm12 = vmor %vm537_vm11, %vm538_vm10  ;;  %vm547_vm14 = vweird.f32 %v530_v38 }
 0x599   :  { %v533_v40 = vmul.f32 %v1496_v37, %v532_v39 }
 0x59b   :  { %v534_v41 = vmul.f32 0.5, %v533_v40 }
 0x59d   :  { %v535_v42 = vsub.f32 1.5, %v534_v41 }
 0x59e   :  { %v1498_v43 = vpop.eup %1497 }
 0x59f   :  { %v536_v44 = vmul.f32 %v1496_v37, %v535_v42  ;;  %v542_v45 = vmul.f32 %v1498_v43, %v530_v38  ;;  %vm548_vm13 = vweird.f32 %v1498_v43 }
 0x5a0   :  { %vm549_vm15 = vmor %vm547_vm14, %vm548_vm13 }
 0x5a1   :  { %v540_v48 = vsel %vm539_vm12, %v1496_v37, %v536_v44  ;;  %v543_v49 = vmul.f32 %v1498_v43, %v542_v45 }
 0x5a2   :  { %v551_v50 = vmul.f32 %v540_v48, %v517_v22 }
 0x5a3   :  { %v544_v53 = vmul.f32 0.5, %v543_v49 }
 0x5a4   :  { %v556_v54 = vmul.f32 %v1459_v46, %v551_v50  ;;  %v1387_v50 = vld [vmem:[%s2032_s4 + $0x38] sm:$0xff] }
 0x5a5   :  { %v545_v56 = vsub.f32 1.5, %v544_v53  ;;  %753 = vmatpush.msra.mxu2 %v1387_v50  ;;  %v1385_v53 = vld [vmem:[%s2032_s4 + $0x28] sm:$0xff] }
 0x5a6   :  { %v561_v55 = vadd.f32 %v1460_v51, %v556_v54  ;;  %v1384_v54 = vld [vmem:[%s2032_s4 + $0x20] sm:$0xff] }
 0x5a7   :  { %v546_v57 = vmul.f32 %v1498_v43, %v545_v56 }
 0x5a8   :  { %1380 = vmatmul.msk.f32.vlgmr.msra.gmra.mxu3 %vm61_vm0, %v561_v55 }
 0x5a9   :  { %v550_v58 = vsel %vm549_vm15, %v1498_v43, %v546_v57 }
 0x5aa   :  { %v552_v59 = vmul.f32 %v550_v58, %v518_v26 }
 0x5ac   :  { %v557_v60 = vmul.f32 %v1459_v46, %v552_v59 }
 0x5ae   :  { %v562_v61 = vadd.f32 %v1460_v51, %v557_v60  ;;  %v1386_v51 = vld [vmem:[%s2032_s4 + $0x30] sm:$0xff] }
 0x5af   :  { %754 = vmatpush.msra.mxu2 %v1386_v51 }
 0x5b0   :  { %1381 = vmatmul.msk.f32.gmra.mxu3 %vm61_vm0, %v562_v61 }
 0x5b1   :  { %755 = vmatpush.msra.mxu2 %v1385_v53 }
 0x5b3   :  { %756 = vmatpush.msra.mxu2 %v1384_v54 }
 0x62b   :  { %v594_v8 = vpop.f32.mrf.mxu3 }
 0x62c   :  { %v595_v9 = vadd.f32 %v1461_v7, %v594_v8 }
 0x62e   :  { %v602_v11 = vmul.f32 0.044715, %v595_v9  ;;  %v600_v47 = vmul.f32 0.5, %v595_v9 }
 0x630   :  { %v604_v13 = vmul.f32 %v602_v11, %v595_v9  ;;  %v1464_v11 = vld [vmem:[%s2043_s15] ss:$0 sm:$0xff] }
 0x632   :  { %v606_v14 = vmul.f32 %v604_v13, %v595_v9 }
 0x633   :  { %v597_v15 = vpop.f32.mrf.mxu3 }
 0x634   :  { %v608_v16 = vadd.f32 %v606_v14, %v595_v9  ;;  %v598_v17 = vadd.f32 %v1461_v7, %v597_v15 }
 0x636   :  { %v610_v18 = vmul.f32 0.7978846, %v608_v16  ;;  %v603_v19 = vmul.f32 0.044715, %v598_v17  ;;  %v601_v28 = vmul.f32 0.5, %v598_v17 }
 0x638   :  { %1499 = vtanh.f32 %v610_v18  ;;  %v605_v20 = vmul.f32 %v603_v19, %v598_v17 }
 0x63a   :  { %v607_v21 = vmul.f32 %v605_v20, %v598_v17 }
 0x63c   :  { %v609_v22 = vadd.f32 %v607_v21, %v598_v17 }
 0x63e   :  { %v1500_v23 = vpop.eup %1499  ;;  %v611_v24 = vmul.f32 0.7978846, %v609_v22  ;;  %v1465_v22 = vld [vmem:[%s2033_s5 + $0x1] ss:$0 sm:$0xff] }
 0x63f   :  { %v614_v25 = vadd.f32 1.0, %v1500_v23 }
 0x640   :  { %1501 = vtanh.f32 %v611_v24 }
 0x641   :  { %v616_v26 = vmul.f32 %v614_v25, %v600_v47 }
 0x643   :  { %1382 = vmatmul.msk.f32.vlgmr.msra.gmra.mxu1 %vm630_vm1, %v616_v26 }
 0x646   :  { %v1502_v27 = vpop.eup %1501 }
 0x647   :  { %v615_v52 = vadd.f32 1.0, %v1502_v27 }
 0x649   :  { %v617_v29 = vmul.f32 %v615_v52, %v601_v28 }
 0x64b   :  { %1383 = vmatmul.msk.f32.gmra.mxu1 %vm630_vm1, %v617_v29 }
 0x6c0   :  { %v654_v31 = vpop.f32.mrf.mxu1 }
 0x6c1   :  { %v655_v32 = vadd.f32 %v1462_v30, %v654_v31 }
 0x6c3   :  { %v660_v33 = vadd.f32 %v655_v32, %v561_v55 }
 0x6c5   :  { %v664_v34 = vsel %vm61_vm0, %v660_v33, 0.0 }
 0x6c6   :  { %665 = vadd.xlane.f32.xlu0 %v664_v34 }
 0x6c8   :  { %v657_v35 = vpop.f32.mrf.mxu1 }
 0x6c9   :  { %v658_v36 = vadd.f32 %v1462_v30, %v657_v35 }
 0x6cb   :  { %v661_v37 = vadd.f32 %v658_v36, %v562_v61 }
 0x6cd   :  { %v667_v38 = vsel %vm61_vm0, %v661_v37, 0.0 }
 0x6ce   :  { %668 = vadd.xlane.f32.xlu1 %v667_v38 }
 0x739   :  { %v666_v39 = vpop.xlane.xlu0 %665 }
 0x73a   :  { %v670_v40 = vmul.f32 %v666_v39, %v1668_v10 }
 0x73c   :  { %v672_v41 = vsub.f32 %v660_v33, %v670_v40 }
 0x73e   :  { %v674_v42 = vmul.f32 %v672_v41, %v672_v41 }
 0x740   :  { %v676_v43 = vsel %vm61_vm0, %v674_v42, 0.0 }
 0x741   :  { %v669_v44 = vpop.xlane.xlu1 %668  ;;  %677 = vadd.xlane.f32.xlu0 %v676_v43 }
 0x742   :  { %v671_v45 = vmul.f32 %v669_v44, %v1668_v10 }
 0x744   :  { %v673_v46 = vsub.f32 %v661_v37, %v671_v45 }
 0x746   :  { %v675_v48 = vmul.f32 %v673_v46, %v673_v46 }
 0x748   :  { %v679_v49 = vsel %vm61_vm0, %v675_v48, 0.0 }
 0x749   :  { %680 = vadd.xlane.f32.xlu1 %v679_v49 }
 0x7b4   :  { %v678_v56 = vpop.xlane.xlu0 %677 }
 0x7b5   :  { %v682_v55 = vmul.f32 %v678_v56, %v1668_v10 }
 0x7b7   :  { %v684_v57 = vadd.f32 1e-12, %v682_v55 }
 0x7b9   :  { %1503 = vrsqrt.f32 %v684_v57  ;;  %vm692_vm3 = vweird.f32 %v684_v57 }
 0x7bc   :  { %v681_v58 = vpop.xlane.xlu1 %680 }
 0x7bd   :  { %v683_v59 = vmul.f32 %v681_v58, %v1668_v10 }
 0x7bf   :  { %v1504_v60 = vpop.eup %1503  ;;  %v685_v61 = vadd.f32 1e-12, %v683_v59 }
 0x7c0   :  { %v687_v62 = vmul.f32 %v1504_v60, %v684_v57  ;;  %vm693_vm2 = vweird.f32 %v1504_v60 }
 0x7c1   :  { %1505 = vrsqrt.f32 %v685_v61  ;;  %vm694_vm4 = vmor %vm692_vm3, %vm693_vm2  ;;  %vm702_vm6 = vweird.f32 %v685_v61 }
 0x7c2   :  { %v688_v63 = vmul.f32 %v1504_v60, %v687_v62 }
 0x7c4   :  { %v689_v0 = vmul.f32 0.5, %v688_v63 }
 0x7c6   :  { %v690_v1 = vsub.f32 1.5, %v689_v0 }
 0x7c7   :  { %v1506_v2 = vpop.eup %1505 }
 0x7c8   :  { %v691_v3 = vmul.f32 %v1504_v60, %v690_v1  ;;  %v697_v4 = vmul.f32 %v1506_v2, %v685_v61  ;;  %vm703_vm5 = vweird.f32 %v1506_v2 }
 0x7c9   :  { %vm704_vm7 = vmor %vm702_vm6, %vm703_vm5 }
 0x7ca   :  { %v695_v7 = vsel %vm694_vm4, %v1504_v60, %v691_v3  ;;  %v698_v8 = vmul.f32 %v1506_v2, %v697_v4  ;;  %v1390_v4 = vld [vmem:[%s2034_s6 + $0x28] sm:$0xff] }
 0x7cb   :  { %v706_v9 = vmul.f32 %v695_v7, %v672_v41 }
 0x7cc   :  { %v699_v13 = vmul.f32 0.5, %v698_v8 }
 0x7cd   :  { %v711_v14 = vmul.f32 %v1463_v6, %v706_v9 }
 0x7ce   :  { %v700_v15 = vsub.f32 1.5, %v699_v13 }
 0x7cf   :  { %v1867_v16 = vadd.f32 %v1464_v11, %v711_v14 }
 0x7d0   :  { %v701_v17 = vmul.f32 %v1506_v2, %v700_v15 }
 0x7d1   :  { %1394 = vmatmul.msk.f32.vlgmr.msra.gmra.mxu2 %vm61_vm0, %v1867_v16 }
 0x7d2   :  { %v705_v18 = vsel %vm704_vm7, %v1506_v2, %v701_v17 }
 0x7d3   :  { %v707_v19 = vmul.f32 %v705_v18, %v673_v46 }
 0x7d5   :  { %v712_v20 = vmul.f32 %v1463_v6, %v707_v19 }
 0x7d7   :  { %v1871_v21 = vadd.f32 %v1464_v11, %v712_v20 }
 0x7d9   :  { %1395 = vmatmul.msk.f32.gmra.mxu2 %vm61_vm0, %v1871_v21 }
 0x854   :  { %v758_v23 = vpop.f32.mrf.mxu2 }
 0x855   :  { %v759_v24 = vadd.f32 %v1465_v22, %v758_v23 }
 0x857   :  { %767 = vrot.lane.b32.xlu0 %v759_v24, %s1563_s27  ;;  %v764_v28 = vmul.f32 0.25, %v759_v24 }
 0x85c   :  { %v761_v47 = vpop.f32.mrf.mxu2 }
 0x85d   :  { %v762_v25 = vadd.f32 %v1465_v22, %v761_v47 }
 0x85f   :  { %926 = vrot.lane.b32.xlu1 %v762_v25, %s1562_s26  ;;  %795 = vrot.lane.b32.xlu2 %v762_v25, %s1563_s27  ;;  %v765_v26 = vmul.f32 0.25, %v762_v25  ;;  %v1881_v27 = vpack.i.bf16 %v762_v25, %v759_v24  ;;  %v1389_v25 = vld [vmem:[%s2034_s6 + $0x20] sm:$0xff] }
 0x861   :  { %924 = vrot.lane.b32.xlu0 %v765_v26, %s1564_s28 }
 0x867   :  { %898 = vrot.lane.b32.xlu2 %v759_v24, %s1562_s26  ;;  %896 = vrot.lane.b32.xlu1 %v764_v28, %s1564_s28 }
 0x8b9   :  { %v796_v52 = vpop.permute.xlu2 %795 }
 0x8ba   :  { %1398 = vmatpush.xpose.msk.msrb.mxu3 %vm183_vm8, %v796_v52 }
 0x8bd   :  { %1399 = vmatmul.msk.f32.vlgmr.msrb.gmra.mxu3 %vm183_vm8, %v765_v26  ;;  %v1392_v26 = vld [vmem:[%s2034_s6 + $0x38] sm:$0xff] }
 0x8c1   :  { %v899_v29 = vpop.permute.xlu2 %898 }
 0x8c2   :  { %1402 = vmatpush.xpose.msk.msrb.mxu1 %vm183_vm8, %v899_v29 }
 0x8c6   :  { %1046 = vmatpush.msra.mxu1 %v1392_v26  ;;  %v1426_v26 = vld [vmem:[%s2040_s12 + $0x68] sm:$0xff] }
 0x8c9   :  { %v768_v30 = vpop.permute.xlu0 %767 }
 0x8ca   :  { %1396 = vmatpush.xpose.msk.msrb.mxu0 %vm183_vm8, %v768_v30 }
 0x8cd   :  { %1397 = vmatmul.msk.f32.vlgmr.msrb.gmra.mxu0 %vm183_vm8, %v764_v28 }
 0x8d1   :  { %v927_v31 = vpop.permute.xlu1 %926 }
 0x8d2   :  { %1404 = vmatpush.xpose.msk.msrb.mxu2 %vm183_vm8, %v927_v31 }
 0x8d3   :  { %v925_v32 = vpop.permute.xlu0 %924 }
 0x8d5   :  { %1405 = vmatmul.msk.f32.vlgmr.msrb.gmra.mxu2 %vm183_vm8, %v925_v32  ;;  %v1466_v32 = vld [vmem:[%s2035_s7 + $0x1] ss:$0 sm:$0xff] }
 0x8d6   :  { %1075 = vmatpush.msra.mxu2 %v1390_v4 }
 0x8d8   :  { %1076 = vmatpush.msra.mxu2 %v1389_v25  ;;  %v1427_v25 = vld [vmem:[%s2040_s12 + $0x70] sm:$0xff] }
 0x8d9   :  { %v897_v33 = vpop.permute.xlu1 %896 }
 0x8da   :  { %1403 = vmatmul.msk.f32.vlgmr.msrb.gmra.mxu1 %vm183_vm8, %v897_v33 }
 0x940   :  { %v819_v34 = vpop.f32.mrf.mxu3 }
 0x941   :  { %v820_v35 = vadd.f32 %v819_v34, %v1736_v12 }
 0x943   :  { %v825_v36 = vsel %vm237_vm9, %v820_v35, -inf }
 0x944   :  { %826 = vmax.xlane.f32.xlu2 %v825_v36 }
 0x94a   :  { %v791_v37 = vpop.f32.mrf.mxu0 }
 0x94b   :  { %v792_v38 = vadd.f32 %v791_v37, %v1732_v5 }
 0x94d   :  { %v822_v39 = vsel %vm237_vm9, %v792_v38, -inf }
 0x94e   :  { %823 = vmax.xlane.f32.xlu0 %v822_v39 }
 0x957   :  { %v921_v40 = vpop.f32.mrf.mxu1 }
 0x958   :  { %v922_v41 = vadd.f32 %v921_v40, %v1732_v5  ;;  %v949_v42 = vpop.f32.mrf.mxu2 }
 0x959   :  { %v950_v43 = vadd.f32 %v949_v42, %v1736_v12 }
 0x95a   :  { %v952_v44 = vsel %vm237_vm9, %v922_v41, -inf }
 0x95b   :  { %953 = vmax.xlane.f32.xlu1 %v952_v44  ;;  %v955_v45 = vsel %vm237_vm9, %v950_v43, -inf }
 0x95c   :  { %956 = vmax.xlane.f32.xlu0 %v955_v45 }
 0x9b7   :  { %v827_v46 = vpop.xlane.xlu2 %826 }
 0x9b8   :  { %v829_v48 = vsub.f32 %v820_v35, %v827_v46 }
 0x9ba   :  { %v832_v49 = vmul.f32 1.442695, %v829_v48 }
 0x9bc   :  { %1507 = vpow2.f32 %v832_v49 }
 0x9c1   :  { %v824_v50 = vpop.xlane.xlu0 %823 }
 0x9c2   :  { %v1508_v51 = vpop.eup %1507  ;;  %v828_v53 = vsub.f32 %v792_v38, %v824_v50 }
 0x9c3   :  { %v837_v54 = vsel %vm237_vm9, %v1508_v51, 0.0 }
 0x9c4   :  { %v830_v56 = vmul.f32 1.442695, %v828_v53  ;;  %838 = vadd.xlane.f32.xlu1 %v837_v54 }
 0x9c6   :  { %1509 = vpow2.f32 %v830_v56  ;;  %v1416_v56 = vld [vmem:[%s2038_s10 + $0x30] sm:$0xff] }
 0x9cc   :  { %v1510_v5 = vpop.eup %1509 }
 0x9cd   :  { %v834_v12 = vsel %vm237_vm9, %v1510_v5, 0.0 }
 0x9ce   :  { %v954_v55 = vpop.xlane.xlu1 %953  ;;  %835 = vadd.xlane.f32.xlu2 %v834_v12  ;;  %v1414_v12 = vld [vmem:[%s2038_s10 + $0x20] sm:$0xff] }
 0x9cf   :  { %v958_v57 = vsub.f32 %v922_v41, %v954_v55  ;;  %v957_v58 = vpop.xlane.xlu0 %956 }
 0x9d0   :  { %v959_v59 = vsub.f32 %v950_v43, %v957_v58 }
 0x9d1   :  { %v960_v60 = vmul.f32 1.442695, %v958_v57 }
 0x9d2   :  { %v962_v61 = vmul.f32 1.442695, %v959_v59 }
 0x9d3   :  { %1511 = vpow2.f32 %v960_v60 }
 0x9d4   :  { %1513 = vpow2.f32 %v962_v61 }
 0x9d9   :  { %v1512_v62 = vpop.eup %1511 }
 0x9da   :  { %v1514_v63 = vpop.eup %1513  ;;  %v964_v0 = vsel %vm237_vm9, %v1512_v62, 0.0 }
 0x9db   :  { %965 = vadd.xlane.f32.xlu0 %v964_v0  ;;  %v967_v1 = vsel %vm237_vm9, %v1514_v63, 0.0 }
 0x9dc   :  { %968 = vadd.xlane.f32.xlu1 %v967_v1 }
 0x9e6   :  { %1446 = vrot.lane.b32.xlu2 %v1881_v27, %s1565_s18  ;;  %s1350_s18 = sshll.u32 %s2045_s17, 4  ;;  %s1351_s18 = int_to_ptr.hbm [resolvable:$true] %s1350_s18 }
 0x9ef   :  { %1451 = vrot.lane.b32.xlu0 %v1881_v27, %s1566_s19  ;;  %v1391_v27 = vld [vmem:[%s2034_s6 + $0x30] sm:$0xff]  ;;  %s1568_s19 = smov 128  }
 0x9f0   :  { %1047 = vmatpush.msra.mxu1 %v1391_v27  ;;  %v1425_v27 = vld [vmem:[%s2040_s12 + $0x60] sm:$0xff] }
 0xa37   :  { %v839_v2 = vpop.xlane.xlu1 %838 }
 0xa38   :  { %1515 = vrcp.f32 %v839_v2 }
 0xa3e   :  { %v1516_v6 = vpop.eup %1515 }
 0xa3f   :  { %v843_v13 = vmul.f32 %v1516_v6, %v1508_v51 }
 0xa41   :  { %v836_v3 = vpop.xlane.xlu2 %835 }
 0xa42   :  { %1517 = vrcp.f32 %v836_v3 }
 0xa48   :  { %v1518_v7 = vpop.eup %1517 }
 0xa49   :  { %v1447_v8 = vpop.permute.xlu2 %1446  ;;  %v842_v14 = vmul.f32 %v1518_v7, %v1510_v5  ;;  %v1415_v5 = vld [vmem:[%s2038_s10 + $0x28] sm:$0xff]  ;;  %v1467_v7 = vld [vmem:[%s2036_s8 + $0x1] ss:$0 sm:$0xff] }
 0xa4a   :  { %v1449_v9 = vunpack.i.h.bf16 %v1447_v8  ;;  %v1448_v11 = vunpack.i.l.bf16 %v1447_v8 }
 0xa4c   :  { %865 = vmatpush.msra.mxu0 %v1448_v11  ;;  %891 = vmatpush.msra.mxu3 %v1449_v9 }
 0xa4d   :  { %1400 = vmatmul.msk.f32.vlgmr.msra.gmra.mxu0 %vm237_vm9, %v842_v14  ;;  %1401 = vmatmul.msk.f32.vlgmr.msra.gmra.mxu3 %vm237_vm9, %v843_v13  ;;  %v1468_v13 = vld [vmem:[%s2037_s9 + $0x1] ss:$0 sm:$0xff] }
 0xa4e   :  { %v966_v15 = vpop.xlane.xlu0 %965 }
 0xa4f   :  { %v969_v17 = vpop.xlane.xlu1 %968  ;;  %1519 = vrcp.f32 %v966_v15 }
 0xa50   :  { %1521 = vrcp.f32 %v969_v17 }
 0xa55   :  { %v1520_v18 = vpop.eup %1519 }
 0xa56   :  { %v1522_v19 = vpop.eup %1521  ;;  %v972_v24 = vmul.f32 %v1520_v18, %v1512_v62 }
 0xa57   :  { %v973_v47 = vmul.f32 %v1522_v19, %v1514_v63 }
 0xa61   :  { %v1452_v20 = vpop.permute.xlu0 %1451 }
 0xa62   :  { %v1454_v22 = vunpack.i.h.bf16 %v1452_v20  ;;  %v1453_v23 = vunpack.i.l.bf16 %v1452_v20 }
 0xa64   :  { %995 = vmatpush.msrb.mxu0 %v1453_v23  ;;  %1021 = vmatpush.msrb.mxu3 %v1454_v22 }
 0xa65   :  { %1406 = vmatmul.msk.f32.vlgmr.msrb.gmra.mxu0 %vm237_vm9, %v972_v24  ;;  %1407 = vmatmul.msk.f32.vlgmr.msrb.gmra.mxu3 %vm237_vm9, %v973_v47  ;;  %v1428_v47 = vld [vmem:[%s2040_s12 + $0x78] sm:$0xff] }
 0xa66   :  { %1234 = vmatpush.msra.mxu3 %v1428_v47 }
 0xa68   :  { %1235 = vmatpush.msra.mxu3 %v1427_v25 }
 0xa6a   :  { %1236 = vmatpush.msra.mxu3 %v1426_v26 }
 0xa6c   :  { %1237 = vmatpush.msra.mxu3 %v1425_v27 }
 0xaca   :  { %v867_v28 = vpop.f32.mrf.mxu0 }
 0xacb   :  { %1410 = vmatmul.msk.f32.vlgmr.msra.gmra.mxu2 %vm183_vm8, %v867_v28  ;;  %v1424_v28 = vld [vmem:[%s2040_s12 + $0x58] sm:$0xff] }
 0xacc   :  { %1238 = vmatpush.msra.mxu3 %v1424_v28 }
 0xad0   :  { %v893_v52 = vpop.f32.mrf.mxu3 }
 0xad3   :  { %1411 = vmatmul.msk.f32.gmra.mxu2 %vm183_vm8, %v893_v52  ;;  %v1423_v52 = vld [vmem:[%s2040_s12 + $0x50] sm:$0xff] }
 0xad4   :  { %1239 = vmatpush.msra.mxu3 %v1423_v52  ;;  %v1471_v52 = vld [vmem:[%s2042_s14 + $0x1] ss:$0 sm:$0xff]  ;;  %s1567_s14 = smov [#allocation2]  }
 0xae2   :  { %v997_v29 = vpop.f32.mrf.mxu0 }
 0xae3   :  { %1408 = vmatmul.msk.f32.vlgmr.msra.gmra.mxu1 %vm183_vm8, %v997_v29  ;;  %v1422_v29 = vld [vmem:[%s2040_s12 + $0x48] sm:$0xff] }
 0xae4   :  { %1240 = vmatpush.msra.mxu3 %v1422_v29 }
 0xae8   :  { %v1023_v30 = vpop.f32.mrf.mxu3 }
 0xaeb   :  { %1409 = vmatmul.msk.f32.gmra.mxu1 %vm183_vm8, %v1023_v30  ;;  %v1421_v30 = vld [vmem:[%s2040_s12 + $0x40] sm:$0xff] }
 0xaec   :  { %1241 = vmatpush.msra.mxu3 %v1421_v30 }
 0xb4e   :  { %v1078_v31 = vpop.f32.mrf.mxu2 }
 0xb56   :  { %v1081_v38 = vpop.f32.mrf.mxu2 }
 0xb60   :  { %v1049_v33 = vpop.f32.mrf.mxu1 }
 0xb61   :  { %v1079_v34 = vadd.f32 %v1078_v31, %v1049_v33  ;;  %v1469_v31 = vld [vmem:[%s2039_s11 + $0x1] ss:$0 sm:$0xff] }
 0xb63   :  { %v1087_v35 = vadd.f32 %v1466_v32, %v1079_v34 }
 0xb65   :  { %v1089_v36 = vadd.f32 %v1087_v35, %v1867_v16 }
 0xb67   :  { %v1095_v37 = vsel %vm61_vm0, %v1089_v36, 0.0 }
 0xb68   :  { %1096 = vadd.xlane.f32.xlu1 %v1095_v37  ;;  %v1052_v39 = vpop.f32.mrf.mxu1 }
 0xb69   :  { %v1082_v40 = vadd.f32 %v1081_v38, %v1052_v39 }
 0xb6b   :  { %v1088_v41 = vadd.f32 %v1466_v32, %v1082_v40 }
 0xb6d   :  { %v1090_v42 = vadd.f32 %v1088_v41, %v1871_v21  ;;  %v1417_v21 = vld [vmem:[%s2038_s10 + $0x38] sm:$0xff] }
 0xb6e   :  { %1177 = vmatpush.msra.mxu0 %v1417_v21  ;;  %v1470_v21 = vld [vmem:[%s2041_s13 + $0x1] ss:$0 sm:$0xff] }
 0xb6f   :  { %v1098_v43 = vsel %vm61_vm0, %v1090_v42, 0.0 }
 0xb70   :  { %1099 = vadd.xlane.f32.xlu1 %v1098_v43  ;;  %1178 = vmatpush.msra.mxu0 %v1416_v56 }
 0xb72   :  { %1179 = vmatpush.msra.mxu0 %v1415_v5 }
 0xb74   :  { %1180 = vmatpush.msra.mxu0 %v1414_v12 }
 0xbdb   :  { %v1097_v44 = vpop.xlane.xlu1 %1096 }
 0xbdc   :  { %v1101_v45 = vmul.f32 %v1097_v44, %v1668_v10 }
 0xbde   :  { %v1103_v46 = vsub.f32 %v1089_v36, %v1101_v45 }
 0xbe0   :  { %v1105_v48 = vmul.f32 %v1103_v46, %v1103_v46 }
 0xbe2   :  { %v1107_v49 = vsel %vm61_vm0, %v1105_v48, 0.0 }
 0xbe3   :  { %1108 = vadd.xlane.f32.xlu2 %v1107_v49  ;;  %v1100_v16 = vpop.xlane.xlu1 %1099 }
 0xbe4   :  { %v1102_v50 = vmul.f32 %v1100_v16, %v1668_v10 }
 0xbe6   :  { %v1104_v51 = vsub.f32 %v1090_v42, %v1102_v50 }
 0xbe8   :  { %v1106_v53 = vmul.f32 %v1104_v51, %v1104_v51 }
 0xbea   :  { %v1110_v54 = vsel %vm61_vm0, %v1106_v53, 0.0 }
 0xbeb   :  { %1111 = vadd.xlane.f32.xlu0 %v1110_v54 }
 0xc56   :  { %v1109_v55 = vpop.xlane.xlu2 %1108 }
 0xc57   :  { %v1113_v57 = vmul.f32 %v1109_v55, %v1668_v10 }
 0xc59   :  { %v1115_v58 = vadd.f32 1e-12, %v1113_v57 }
 0xc5b   :  { %1523 = vrsqrt.f32 %v1115_v58  ;;  %vm1123_vm10 = vweird.f32 %v1115_v58 }
 0xc5e   :  { %v1112_v59 = vpop.xlane.xlu0 %1111 }
 0xc5f   :  { %v1114_v60 = vmul.f32 %v1112_v59, %v1668_v10 }
 0xc61   :  { %v1524_v61 = vpop.eup %1523  ;;  %v1116_v62 = vadd.f32 1e-12, %v1114_v60 }
 0xc62   :  { %v1118_v63 = vmul.f32 %v1524_v61, %v1115_v58  ;;  %vm1124_vm9 = vweird.f32 %v1524_v61 }
 0xc63   :  { %1525 = vrsqrt.f32 %v1116_v62  ;;  %vm1125_vm11 = vmor %vm1123_vm10, %vm1124_vm9  ;;  %vm1133_vm13 = vweird.f32 %v1116_v62 }
 0xc64   :  { %v1119_v0 = vmul.f32 %v1524_v61, %v1118_v63 }
 0xc66   :  { %v1120_v1 = vmul.f32 0.5, %v1119_v0 }
 0xc68   :  { %v1121_v2 = vsub.f32 1.5, %v1120_v1 }
 0xc69   :  { %v1526_v3 = vpop.eup %1525 }
 0xc6a   :  { %v1122_v4 = vmul.f32 %v1524_v61, %v1121_v2  ;;  %v1128_v6 = vmul.f32 %v1526_v3, %v1116_v62  ;;  %vm1134_vm12 = vweird.f32 %v1526_v3 }
 0xc6b   :  { %vm1135_vm14 = vmor %vm1133_vm13, %vm1134_vm12 }
 0xc6c   :  { %v1126_v8 = vsel %vm1125_vm11, %v1524_v61, %v1122_v4  ;;  %v1129_v9 = vmul.f32 %v1526_v3, %v1128_v6 }
 0xc6d   :  { %v1137_v11 = vmul.f32 %v1126_v8, %v1103_v46  ;;  %v1312_v8 = vld [vmem:[%s2044_s16 + $0x18] sm:$0xff] }
 0xc6e   :  { %v1130_v14 = vmul.f32 0.5, %v1129_v9  ;;  %1331 = vmatpush.msrb.mxu1 %v1312_v8  ;;  %v1311_v9 = vld [vmem:[%s2044_s16 + $0x10] sm:$0xff] }
 0xc6f   :  { %v1142_v15 = vmul.f32 %v1467_v7, %v1137_v11  ;;  %v1310_v11 = vld [vmem:[%s2044_s16 + $0x8] sm:$0xff] }
 0xc70   :  { %v1131_v17 = vsub.f32 1.5, %v1130_v14  ;;  %1332 = vmatpush.msrb.mxu1 %v1311_v9 }
 0xc71   :  { %v1147_v18 = vadd.f32 %v1468_v13, %v1142_v15 }
 0xc72   :  { %v1132_v19 = vmul.f32 %v1526_v3, %v1131_v17  ;;  %1333 = vmatpush.msrb.mxu1 %v1310_v11 }
 0xc73   :  { %1419 = vmatmul.msk.f32.vlgmr.msra.gmra.mxu0 %vm61_vm0, %v1147_v18 }
 0xc74   :  { %v1136_v20 = vsel %vm1135_vm14, %v1526_v3, %v1132_v19 }
 0xc75   :  { %v1138_v22 = vmul.f32 %v1136_v20, %v1104_v51 }
 0xc77   :  { %v1143_v23 = vmul.f32 %v1467_v7, %v1138_v22 }
 0xc79   :  { %v1148_v24 = vadd.f32 %v1468_v13, %v1143_v23  ;;  %v1309_v13 = vld [vmem:[%s2044_s16] sm:$0xff] }
 0xc7a   :  { %1334 = vmatpush.msrb.mxu1 %v1309_v13 }
 0xc7b   :  { %1420 = vmatmul.msk.f32.gmra.mxu0 %vm61_vm0, %v1148_v24 }
 0xcf0   :  { %v1182_v32 = vpop.f32.mrf.mxu0 }
 0xcf1   :  { %v1183_v33 = vadd.f32 %v1469_v31, %v1182_v32 }
 0xcf3   :  { %v1190_v34 = vmul.f32 0.044715, %v1183_v33  ;;  %v1188_v48 = vmul.f32 0.5, %v1183_v33 }
 0xcf5   :  { %v1192_v35 = vmul.f32 %v1190_v34, %v1183_v33 }
 0xcf7   :  { %v1194_v36 = vmul.f32 %v1192_v35, %v1183_v33 }
 0xcf8   :  { %v1185_v37 = vpop.f32.mrf.mxu0 }
 0xcf9   :  { %v1196_v38 = vadd.f32 %v1194_v36, %v1183_v33  ;;  %v1186_v39 = vadd.f32 %v1469_v31, %v1185_v37  ;;  %v1472_v31 = vld [vmem:[%s2043_s15 + $0x1] ss:$0 sm:$0xff]  ;;  %s1348_s15 = sshll.u32 %s1567_s14, 4  ;;  %s1349_s15 = int_to_ptr.vmem [resolvable:$true] %s1348_s15 }
 0xcfb   :  { %v1198_v40 = vmul.f32 0.7978846, %v1196_v38  ;;  %v1191_v41 = vmul.f32 0.044715, %v1186_v39  ;;  %v1189_v51 = vmul.f32 0.5, %v1186_v39 }
 0xcfd   :  { %1527 = vtanh.f32 %v1198_v40  ;;  %v1193_v42 = vmul.f32 %v1191_v41, %v1186_v39 }
 0xcff   :  { %v1195_v43 = vmul.f32 %v1193_v42, %v1186_v39 }
 0xd01   :  { %v1197_v44 = vadd.f32 %v1195_v43, %v1186_v39 }
 0xd03   :  { %v1528_v45 = vpop.eup %1527  ;;  %v1199_v46 = vmul.f32 0.7978846, %v1197_v44 }
 0xd04   :  { %v1202_v49 = vadd.f32 1.0, %v1528_v45 }
 0xd05   :  { %1529 = vtanh.f32 %v1199_v46 }
 0xd06   :  { %v1204_v16 = vmul.f32 %v1202_v49, %v1188_v48 }
 0xd08   :  { %1430 = vmatmul.msk.f32.vlgmr.msra.gmra.mxu3 %vm630_vm1, %v1204_v16 }
 0xd0b   :  { %v1530_v50 = vpop.eup %1529 }
 0xd0c   :  { %v1203_v53 = vadd.f32 1.0, %v1530_v50 }
 0xd0e   :  { %v1205_v54 = vmul.f32 %v1203_v53, %v1189_v51 }
 0xd10   :  { %1431 = vmatmul.msk.f32.gmra.mxu3 %vm630_vm1, %v1205_v54 }
 0xd8b   :  { %v1243_v56 = vpop.f32.mrf.mxu3 }
 0xd8c   :  { %v1244_v5 = vadd.f32 %v1470_v21, %v1243_v56 }
 0xd8e   :  { %v1249_v12 = vadd.f32 %v1244_v5, %v1147_v18 }
 0xd90   :  { %v1255_v55 = vsel %vm61_vm0, %v1249_v12, 0.0 }
 0xd91   :  { %1256 = vadd.xlane.f32.xlu1 %v1255_v55 }
 0xd93   :  { %v1246_v57 = vpop.f32.mrf.mxu3 }
 0xd94   :  { %v1247_v58 = vadd.f32 %v1470_v21, %v1246_v57 }
 0xd96   :  { %v1250_v59 = vadd.f32 %v1247_v58, %v1148_v24 }
 0xd98   :  { %v1258_v60 = vsel %vm61_vm0, %v1250_v59, 0.0 }
 0xd99   :  { %1259 = vadd.xlane.f32.xlu1 %v1258_v60 }
 0xe04   :  { %v1257_v61 = vpop.xlane.xlu1 %1256 }
 0xe05   :  { %v1261_v62 = vmul.f32 %v1257_v61, %v1668_v10 }
 0xe07   :  { %v1263_v63 = vsub.f32 %v1249_v12, %v1261_v62 }
 0xe09   :  { %v1265_v0 = vmul.f32 %v1263_v63, %v1263_v63 }
 0xe0b   :  { %v1267_v1 = vsel %vm61_vm0, %v1265_v0, 0.0 }
 0xe0c   :  { %1268 = vadd.xlane.f32.xlu1 %v1267_v1  ;;  %v1260_v2 = vpop.xlane.xlu1 %1259 }
 0xe0d   :  { %v1262_v3 = vmul.f32 %v1260_v2, %v1668_v10 }
 0xe0f   :  { %v1264_v4 = vsub.f32 %v1250_v59, %v1262_v3 }
 0xe11   :  { %v1266_v6 = vmul.f32 %v1264_v4, %v1264_v4 }
 0xe13   :  { %v1270_v7 = vsel %vm61_vm0, %v1266_v6, 0.0 }
 0xe14   :  { %1271 = vadd.xlane.f32.xlu1 %v1270_v7 }
 0xe7f   :  { %v1269_v14 = vpop.xlane.xlu1 %1268 }
 0xe80   :  { %v1273_v15 = vmul.f32 %v1269_v14, %v1668_v10 }
 0xe82   :  { %v1275_v17 = vadd.f32 1e-12, %v1273_v15 }
 0xe84   :  { %1531 = vrsqrt.f32 %v1275_v17  ;;  %vm1283_vm1 = vweird.f32 %v1275_v17 }
 0xe87   :  { %v1272_v18 = vpop.xlane.xlu1 %1271 }
 0xe88   :  { %v1274_v19 = vmul.f32 %v1272_v18, %v1668_v10 }
 0xe8a   :  { %v1532_v20 = vpop.eup %1531  ;;  %v1276_v22 = vadd.f32 1e-12, %v1274_v19 }
 0xe8b   :  { %v1278_v23 = vmul.f32 %v1532_v20, %v1275_v17  ;;  %vm1284_vm15 = vweird.f32 %v1532_v20 }
 0xe8c   :  { %1533 = vrsqrt.f32 %v1276_v22  ;;  %vm1285_vm2 = vmor %vm1283_vm1, %vm1284_vm15  ;;  %vm1293_vm4 = vweird.f32 %v1276_v22 }
 0xe8d   :  { %v1279_v24 = vmul.f32 %v1532_v20, %v1278_v23 }
 0xe8f   :  { %v1280_v47 = vmul.f32 0.5, %v1279_v24 }
 0xe91   :  { %v1281_v25 = vsub.f32 1.5, %v1280_v47 }
 0xe92   :  { %v1534_v26 = vpop.eup %1533 }
 0xe93   :  { %v1282_v27 = vmul.f32 %v1532_v20, %v1281_v25  ;;  %v1288_v28 = vmul.f32 %v1534_v26, %v1276_v22  ;;  %vm1294_vm3 = vweird.f32 %v1534_v26 }
 0xe94   :  { %vm1295_vm5 = vmor %vm1293_vm4, %vm1294_vm3 }
 0xe95   :  { %v1286_v29 = vsel %vm1285_vm2, %v1532_v20, %v1282_v27  ;;  %v1289_v30 = vmul.f32 %v1534_v26, %v1288_v28 }
 0xe96   :  { %v1297_v10 = vmul.f32 %v1286_v29, %v1263_v63 }
 0xe97   :  { %v1290_v32 = vmul.f32 0.5, %v1289_v30 }
 0xe98   :  { %v1302_v33 = vmul.f32 %v1471_v52, %v1297_v10 }
 0xe99   :  { %v1291_v34 = vsub.f32 1.5, %v1290_v32 }
 0xe9a   :  { %v1307_v35 = vadd.f32 %v1472_v31, %v1302_v33 }
 0xe9b   :  { %v1292_v36 = vmul.f32 %v1534_v26, %v1291_v34 }
 0xe9c   :  { %1434 = vmatmul.msk.f32.vlgmr.msrb.gmra.mxu1 %vm61_vm0, %v1307_v35 }
 0xe9d   :  { %v1296_v37 = vsel %vm1295_vm5, %v1534_v26, %v1292_v36 }
 0xe9e   :  { %v1298_v38 = vmul.f32 %v1296_v37, %v1264_v4 }
 0xea0   :  { %v1303_v39 = vmul.f32 %v1471_v52, %v1298_v38 }
 0xea2   :  { %v1308_v40 = vadd.f32 %v1472_v31, %v1303_v39 }
 0xea4   :  { %1435 = vmatmul.msk.f32.gmra.mxu1 %vm61_vm0, %v1308_v40 }
 0xf19   :  { %v1336_v41 = vpop.f32.mrf.mxu1 }
 0xf1a   :  { %1342 = vst.msk [vmem:[#allocation2] sm:$0xff] %vm183_vm8, %v1336_v41 }
 0xf21   :  { %v1339_v42 = vpop.f32.mrf.mxu1 }
 0xf22   :  { %1343 = vst.msk [vmem:[#allocation2 + $0x8] sm:$0xff] %vm183_vm8, %v1339_v42 }
 0xf23   :  { %1356 = dma.vmem_to_hbm [thread:$0]  %s1349_s15, 256, %s1351_s18, [#allocation3], %s1568_s19, %s1568_s19, %s1569_s2  }
 0xf24   :  { %1559 = dma.done.wait [#allocation3], 256  }
 0xf25   :  { %1560 = vsyncadd [#allocation3], 4294967040 }
 0xf26   :  { %1361 = vsyncpa [#allocation3], 1 }

</bundles_post_ra>
